<compile_context>
chip_gen: v7x
topology: tpu7x:2x2x1
jax: 0.10.0
libtpu: 0.0.40
codegen_flags: <defaults>
</compile_context>

<pallas_src>
import functools
import math

import jax
import jax.numpy as jnp
from jax import lax
from jax.experimental import pallas as pl
from jax.experimental.pallas import tpu as pltpu


# v7x-safe (64 MiB physical VMEM) and plenty for v5e/v6e; all tile plans below
# stay well under this even with triple-buffered weight tiles.
_VMEM_LIMIT = 48 * 1024 * 1024
# VMEM budget reserved for the (buffered) bf16 weight stream of one matmul.
_WEIGHT_BUDGET = 24 * 1024 * 1024
_WEIGHT_BUFFERS = 3


# ----------------------------------------------------------------------------
# tile planning helpers (weight-bandwidth-bound regime: few, big, lane-dense tiles)
# ----------------------------------------------------------------------------
def _pick_tile_m(m, pref=256):
    if m <= pref:
        return m                      # full dim is always a legal block
    for t in (pref, 128, 64):         # prefer an even divisor (multiple of 8)
        if m % t == 0:
            return t
    return pref                       # uneven: Pallas masks the boundary block


def _pick_tile_n(n, k):
    """Largest lane-dense N tile whose buffered bf16 weight slab fits the budget."""
    if n <= 256:
        return n
    cap = _WEIGHT_BUDGET // (_WEIGHT_BUFFERS * k * 2)   # bf16 weights
    cap = max(128, (cap // 128) * 128)
    return n if cap >= n else cap


def _plan_tiles(m, n, k):
    """Pick (tm, tn).  If the whole GEMM would be a single program, split N in
    half (multiple of 128) so v7x's two TensorCores both get work."""
    tm = _pick_tile_m(m)
    tn = _pick_tile_n(n, k)
    if pl.cdiv(m, tm) == 1 and pl.cdiv(n, tn) == 1 and n >= 256:
        tn = ((pl.cdiv(n, 2) + 127) // 128) * 128
    return tm, tn


def _weight_spec(k, tn, nj):
    """BlockSpec for the (K, tn) weight tile.  Deeper buffering on the dominant
    (weight) DMA stream when there are enough distinct tiles for it to matter."""
    idx = lambda i, j: (0, j)
    if nj >= 3:
        try:
            return pl.BlockSpec((k, tn), idx,
                                pipeline_mode=pl.Buffered(_WEIGHT_BUFFERS))
        except (TypeError, AttributeError):
            pass  # TODO(synk): pipeline_mode unsupported on this jax version
    return pl.BlockSpec((k, tn), idx)


def _gelu_tanh(y):
    # TODO(synk): PyTorch nn.GELU default is the exact erf form; tanh approximation
    # used here (difference ~1e-3, erf not guaranteed in Mosaic).
    c = math.sqrt(2.0 / math.pi)
    return 0.5 * y * (1.0 + jnp.tanh(c * (y + 0.044715 * y * y * y)))


# ----------------------------------------------------------------------------
# Pallas kernels
# ----------------------------------------------------------------------------
def _linear_kernel(x_ref, w_ref, b_ref, o_ref):
    """out = x @ w + b   (bf16 MXU inputs, f32 accumulation)."""
    y = jnp.dot(x_ref[...].astype(jnp.bfloat16), w_ref[...],
                preferred_element_type=jnp.float32)
    o_ref[...] = (y + b_ref[...]).astype(o_ref.dtype)


def _ln_linear_kernel(x_ref, g_ref, lnb_ref, w_ref, b_ref, o_ref, h_ref,
                      *, eps, activation, cache_ln):
    """out = act(LayerNorm(x) @ w + b).  LN statistics kept in f32.  When
    cache_ln is True the LN result for the current M tile is computed once at
    j == 0 into a VMEM scratch and reused for every N tile (N axis 'arbitrary')."""
    def _ln():
        x = x_ref[...]                                     # (tm, K) f32
        mu = jnp.mean(x, axis=-1, keepdims=True)
        xc = x - mu
        var = jnp.mean(xc * xc, axis=-1, keepdims=True)
        h = xc * lax.rsqrt(var + eps) * g_ref[...] + lnb_ref[...]
        return h.astype(jnp.bfloat16)

    if cache_ln:
        @pl.when(pl.program_id(1) == 0)
        def _():
            h_ref[...] = _ln()
        h = h_ref[...]
    else:
        h = _ln()

    y = jnp.dot(h, w_ref[...], preferred_element_type=jnp.float32)
    y = y + b_ref[...]
    if activation == "gelu":
        y = _gelu_tanh(y)                                  # f32 transcendental math
    o_ref[...] = y.astype(o_ref.dtype)


def _linear_res_kernel(x_ref, w_ref, b_ref, r_ref, o_ref):
    """out = residual + x @ w + b   (residual add fused, f32)."""
    y = jnp.dot(x_ref[...], w_ref[...], preferred_element_type=jnp.float32)
    o_ref[...] = (r_ref[...] + y + b_ref[...]).astype(o_ref.dtype)


def _attention_kernel(qkv_ref, o_ref, *, heads, hd, bt):
    """Per-batch-block attention.  qkv_ref: (bt, S, 3*heads*hd) bf16 in the timm
    layout (softmax scale already folded into the q columns).  Writes
    (bt, S, heads*hd) bf16.

    Heads are processed in groups of `grp` heads so that (when hd divides 128)
    every output store is a lane-dense 128-wide slab and at most `grp` per-head
    outputs are live at once."""
    D = heads * hd
    if hd < 128 and 128 % hd == 0:
        grp = min(heads, 128 // hd)
        while heads % grp:
            grp -= 1
    else:
        grp = 1
    gw = grp * hd

    for b in range(bt):                                    # static unroll (bt <= 8)
        row = qkv_ref[b]                                   # (S, 3D) bf16, one load
        for g in range(heads // grp):
            outs = []
            for hh in range(grp):
                off = (g * grp + hh) * hd
                q = row[:, off:off + hd]                   # scale already folded in
                k = row[:, D + off:D + off + hd]
                v = row[:, 2 * D + off:2 * D + off + hd]
                s = lax.dot_general(q, k, (((1,), (1,)), ((), ())),
                                    preferred_element_type=jnp.float32)  # (S,S) f32
                s = s - jnp.max(s, axis=-1, keepdims=True)
                p = jnp.exp(s)
                p = p * pl.reciprocal(jnp.sum(p, axis=-1, keepdims=True),
                                      approx=True)                        # EUP slot
                outs.append(jnp.dot(p.astype(v.dtype), v,
                                    preferred_element_type=jnp.float32))  # (S, hd)
            blk = outs[0] if grp == 1 else jnp.concatenate(outs, axis=-1)
            o_ref[b, :, g * gw:(g + 1) * gw] = blk.astype(o_ref.dtype)


# ----------------------------------------------------------------------------
# wrappers
# ----------------------------------------------------------------------------
def linear(x, w, b, out_dtype=jnp.float32):
    M, K = x.shape
    N = w.shape[1]
    tm, tn = _plan_tiles(M, N, K)
    ni, nj = pl.cdiv(M, tm), pl.cdiv(N, tn)
    return pl.pallas_call(
        _linear_kernel,
        grid=(ni, nj),
        in_specs=[
            pl.BlockSpec((tm, K), lambda i, j: (i, 0)),
            _weight_spec(K, tn, nj),
            pl.BlockSpec((1, tn), lambda i, j: (0, j)),
        ],
        out_specs=pl.BlockSpec((tm, tn), lambda i, j: (i, j)),
        out_shape=jax.ShapeDtypeStruct((M, N), out_dtype),
        compiler_params=pltpu.CompilerParams(
            dimension_semantics=("parallel", "parallel"),
            vmem_limit_bytes=_VMEM_LIMIT),
        cost_estimate=pl.CostEstimate(
            flops=2 * M * K * N, transcendentals=0,
            bytes_accessed=x.size * x.dtype.itemsize + w.size * w.dtype.itemsize
            + M * N * jnp.dtype(out_dtype).itemsize),
    )(x, w, b.reshape(1, N))


def ln_linear(x, gamma, beta, w, b, *, out_dtype, activation="none", eps=1e-6):
    M, K = x.shape
    N = w.shape[1]
    tm, tn = _plan_tiles(M, N, K)
    ni, nj = pl.cdiv(M, tm), pl.cdiv(N, tn)
    # Several M tiles: parallelize M (megacore) and keep N sequential so LN of
    # an M tile is computed once and cached in VMEM scratch.  Single M tile:
    # parallelize N instead (>=2 programs for v7x) and recompute the tiny LN.
    cache_ln = ni >= 2
    dims = ("parallel", "arbitrary") if cache_ln else ("arbitrary", "parallel")
    trans = M * N + M if activation == "gelu" else M
    return pl.pallas_call(
        functools.partial(_ln_linear_kernel, eps=eps, activation=activation,
                          cache_ln=cache_ln),
        grid=(ni, nj),
        in_specs=[
            pl.BlockSpec((tm, K), lambda i, j: (i, 0)),
            pl.BlockSpec((1, K), lambda i, j: (0, 0)),
            pl.BlockSpec((1, K), lambda i, j: (0, 0)),
            _weight_spec(K, tn, nj),
            pl.BlockSpec((1, tn), lambda i, j: (0, j)),
        ],
        out_specs=pl.BlockSpec((tm, tn), lambda i, j: (i, j)),
        out_shape=jax.ShapeDtypeStruct((M, N), out_dtype),
        scratch_shapes=[pltpu.VMEM((tm, K), jnp.bfloat16)],
        compiler_params=pltpu.CompilerParams(
            dimension_semantics=dims, vmem_limit_bytes=_VMEM_LIMIT),
        cost_estimate=pl.CostEstimate(
            flops=2 * M * K * N + 8 * M * K, transcendentals=trans,
            bytes_accessed=4 * M * K + w.size * w.dtype.itemsize
            + M * N * jnp.dtype(out_dtype).itemsize),
    )(x, gamma.reshape(1, K), beta.reshape(1, K), w, b.reshape(1, N))


def linear_residual(x, w, b, residual):
    """residual + x @ w + b  (x bf16, residual/output f32, residual updated in place)."""
    M, K = x.shape
    N = w.shape[1]
    tm, tn = _plan_tiles(M, N, K)
    ni, nj = pl.cdiv(M, tm), pl.cdiv(N, tn)
    return pl.pallas_call(
        _linear_res_kernel,
        grid=(ni, nj),
        in_specs=[
            pl.BlockSpec((tm, K), lambda i, j: (i, 0)),
            _weight_spec(K, tn, nj),
            pl.BlockSpec((1, tn), lambda i, j: (0, j)),
            pl.BlockSpec((tm, tn), lambda i, j: (i, j)),
        ],
        out_specs=pl.BlockSpec((tm, tn), lambda i, j: (i, j)),
        out_shape=jax.ShapeDtypeStruct((M, N), jnp.float32),
        input_output_aliases={3: 0},          # residual stream updated in place
        compiler_params=pltpu.CompilerParams(
            dimension_semantics=("parallel", "parallel"),
            vmem_limit_bytes=_VMEM_LIMIT),
        cost_estimate=pl.CostEstimate(
            flops=2 * M * K * N, transcendentals=0,
            bytes_accessed=2 * M * K + w.size * w.dtype.itemsize + 8 * M * N),
    )(x, w, b.reshape(1, N), residual)


def attention(qkv, heads, hd):
    """qkv: (B, S, 3*heads*hd) bf16 -> (B, S, heads*hd) bf16, grid over batch
    blocks (>= 2 programs whenever B >= 2 so v7x's two TensorCores are used)."""
    B, S, threeD = qkv.shape
    D = heads * hd
    bt = max(1, min(8, B // 2)) if B >= 2 else 1
    while B % bt:
        bt -= 1
    nb = B // bt
    return pl.pallas_call(
        functools.partial(_attention_kernel, heads=heads, hd=hd, bt=bt),
        grid=(nb,),
        in_specs=[pl.BlockSpec((bt, S, threeD), lambda b: (b, 0, 0))],
        out_specs=pl.BlockSpec((bt, S, D), lambda b: (b, 0, 0)),
        out_shape=jax.ShapeDtypeStruct((B, S, D), jnp.bfloat16),
        compiler_params=pltpu.CompilerParams(dimension_semantics=("parallel",),
                                             vmem_limit_bytes=_VMEM_LIMIT),
        cost_estimate=pl.CostEstimate(
            flops=4 * B * heads * S * S * hd,
            transcendentals=B * heads * S * S,
            bytes_accessed=qkv.size * 2 + B * S * D * 2),
    )(qkv)


# ----------------------------------------------------------------------------
# ViT forward (glue in plain JAX, compute in the kernels above)
# ----------------------------------------------------------------------------
def vit_forward(x_nchw, params, cfg):
    B, C, H, W = x_nchw.shape
    P, D, heads = cfg["patch"], cfg["dim"], cfg["heads"]
    hd = D // heads
    nH, nW = H // P, W // P
    N = nH * nW
    S = N + 1

    # --- PatchEmbed: conv16x16/s16 as patch-flatten + tiled matmul ---
    patches = x_nchw.reshape(B, C, nH, P, nW, P)
    patches = patches.transpose(0, 2, 4, 1, 3, 5).reshape(B * N, C * P * P)
    tok = linear(patches, params["patch_w"], params["patch_b"]).reshape(B, N, D)

    # --- cls token + positional embedding ---
    # TODO(synk): cls concat + pos add left in plain JAX (single elementwise pass).
    pos = params["pos_embed"]                                 # (1, S, D)
    cls = jnp.broadcast_to(params["cls_token"] + pos[:, :1], (B, 1, D))
    x2 = jnp.concatenate([cls, tok + pos[:, 1:]], axis=1).reshape(B * S, D)  # f32

    # --- transformer blocks ---
    for blk in params["blocks"]:
        # attention sub-block: LN1 fused into qkv matmul, residual fused into proj
        qkv = ln_linear(x2, blk["ln1_g"], blk["ln1_b"], blk["qkv_w"], blk["qkv_b"],
                        out_dtype=jnp.bfloat16)               # (B*S, 3D) bf16
        attn = attention(qkv.reshape(B, S, 3 * D), heads, hd)  # (B,S,D) bf16
        x2 = linear_residual(attn.reshape(B * S, D), blk["proj_w"], blk["proj_b"], x2)

        # MLP sub-block: LN2 + fc1 + GELU fused, residual fused into fc2
        h = ln_linear(x2, blk["ln2_g"], blk["ln2_b"], blk["fc1_w"], blk["fc1_b"],
                      out_dtype=jnp.bfloat16, activation="gelu")       # bf16
        x2 = linear_residual(h, blk["fc2_w"], blk["fc2_b"], x2)

    # --- final norm + token pooling + head (LN fused into head matmul;
    #     LN is row-wise so norm-then-slice == slice-then-norm for the cls row) ---
    cls_out = x2.reshape(B, S, D)[:, 0]                        # (B, D)
    logits = ln_linear(cls_out, params["norm_g"], params["norm_b"],
                       params["head_w"], params["head_b"], out_dtype=jnp.float32)
    return logits


# ----------------------------------------------------------------------------
# parameters
# ----------------------------------------------------------------------------
def init_params(key, cfg):
    C, P, D = cfg["in_chans"], cfg["patch"], cfg["dim"]
    S = cfg["num_patches"] + 1
    mlp = cfg["mlp_hidden"]
    nc = cfg["num_classes"]

    def nrm(k, shape, std=0.02):
        return std * jax.random.normal(k, shape, jnp.float32)

    def nrm_bf16(k, shape, std=0.02):
        return nrm(k, shape, std).astype(jnp.bfloat16)

    keys = iter(jax.random.split(key, 8 + 8 * cfg["depth"]))
    params = {
        "patch_w": nrm_bf16(next(keys), (C * P * P, D)),
        "patch_b": jnp.zeros((D,), jnp.float32),
        "cls_token": nrm(next(keys), (1, 1, D)),
        "pos_embed": nrm(next(keys), (1, S, D)),   # nn.init.normal_(std=0.02)
        "norm_g": jnp.ones((D,), jnp.float32),
        "norm_b": jnp.zeros((D,), jnp.float32),
        "head_w": nrm_bf16(next(keys), (D, nc)),
        "head_b": jnp.zeros((nc,), jnp.float32),
        "blocks": [],
    }
    for _ in range(cfg["depth"]):
        params["blocks"].append({
            "ln1_g": jnp.ones((D,), jnp.float32),
            "ln1_b": jnp.zeros((D,), jnp.float32),
            "qkv_w": nrm_bf16(next(keys), (D, 3 * D)),
            "qkv_b": jnp.zeros((3 * D,), jnp.float32),
            "proj_w": nrm_bf16(next(keys), (D, D)),
            "proj_b": jnp.zeros((D,), jnp.float32),
            "ln2_g": jnp.ones((D,), jnp.float32),
            "ln2_b": jnp.zeros((D,), jnp.float32),
            "fc1_w": nrm_bf16(next(keys), (D, mlp)),
            "fc1_b": jnp.zeros((mlp,), jnp.float32),
            "fc2_w": nrm_bf16(next(keys), (mlp, D)),
            "fc2_b": jnp.zeros((D,), jnp.float32),
        })
    return params


def prepare_params(params, cfg):
    """One-time parameter prep (outside jit): fold the attention softmax scale
    (hd ** -0.5) into the q columns of every qkv projection so the attention
    kernel never rescales q (removes a VPU multiply and the post-cast bf16
    rounding of the scale)."""
    D = cfg["dim"]
    scale = (D // cfg["heads"]) ** -0.5
    out = dict(params)
    out["blocks"] = []
    for blk in params["blocks"]:
        blk = dict(blk)
        w = blk["qkv_w"]
        blk["qkv_w"] = jnp.concatenate(
            [(w[:, :D].astype(jnp.float32) * scale).astype(w.dtype), w[:, D:]],
            axis=1)
        blk["qkv_b"] = jnp.concatenate(
            [blk["qkv_b"][:D] * scale, blk["qkv_b"][D:]], axis=0)
        out["blocks"].append(blk)
    return out


if __name__ == "__main__":
    # Small config consistent with the module's structure.
    # (Real 'base' = dim 768, 12 heads, 12 blocks, img_size 64 -> 17 tokens,
    #  num_classes 1000; scaled down here for the synthetic test.  The tile
    #  planning / kernels are shape-generic and sized for the real config too.)
    cfg = dict(
        in_chans=3, patch=16, img_size=32,
        dim=64, heads=4, depth=2, num_classes=16,
    )
    cfg["num_patches"] = (cfg["img_size"] // cfg["patch"]) ** 2
    cfg["mlp_hidden"] = 4 * cfg["dim"]

    key = jax.random.PRNGKey(0)
    kx, kp = jax.random.split(key)
    x = jax.random.normal(kx, (2, cfg["in_chans"], cfg["img_size"], cfg["img_size"]),
                          jnp.float32)
    params = prepare_params(init_params(kp, cfg), cfg)

    fwd = jax.jit(functools.partial(vit_forward, cfg=cfg))
    logits = jax.block_until_ready(fwd(x, params))

    assert logits.shape == (2, cfg["num_classes"])
    assert bool(jnp.all(jnp.isfinite(logits)))
    print("KERNEL_OK")
</pallas_src>

<mosaic_0001>
module attributes {stable_mosaic.version = 11 : i64} {
  func.func @_linear_kernel(%arg0: i32, %arg1: i32, %arg2: memref<8x768xf32, #tpu.memory_space<vmem>>, %arg3: memref<768x64xbf16, #tpu.memory_space<vmem>>, %arg4: memref<1x64xf32, #tpu.memory_space<vmem>>, %arg5: memref<8x64xf32, #tpu.memory_space<vmem>>) attributes {dimension_semantics = [#tpu.dimension_semantics<parallel>, #tpu.dimension_semantics<parallel>], iteration_bounds = array<i64: 1, 1>, scalar_prefetch = 0 : i64, scratch_operands = 0 : i64, tpu.core_type = #tpu.core_type<tc>, window_params = [{transform_indices = @transform_0, window_bounds = array<i64: 8, 768>}, {transform_indices = @transform_1, window_bounds = array<i64: 768, 64>}, {transform_indices = @transform_2, window_bounds = array<i64: 1, 64>}, {transform_indices = @transform_3, window_bounds = array<i64: 8, 64>}]} {
    %c0 = arith.constant 0 : index
    %c0_0 = arith.constant 0 : index
    %0 = vector.load %arg2[%c0, %c0_0] : memref<8x768xf32, #tpu.memory_space<vmem>>, vector<8x768xf32>
    %1 = arith.truncf %0 : vector<8x768xf32> to vector<8x768xbf16>
    %c0_1 = arith.constant 0 : index
    %c0_2 = arith.constant 0 : index
    %2 = vector.load %arg3[%c0_1, %c0_2] : memref<768x64xbf16, #tpu.memory_space<vmem>>, vector<768x64xbf16>
    %cst = arith.constant dense<0.000000e+00> : vector<8x64xf32>
    %3 = tpu.matmul %1, %2, %cst {dimension_numbers = #tpu.dot_dimension_numbers<[1], [0], [0], [1], [0, 0, 1, 1], [], []>} : vector<8x768xbf16>, vector<768x64xbf16>, vector<8x64xf32> -> vector<8x64xf32>
    %c0_3 = arith.constant 0 : index
    %c0_4 = arith.constant 0 : index
    %4 = vector.load %arg4[%c0_3, %c0_4] : memref<1x64xf32, #tpu.memory_space<vmem>>, vector<1x64xf32>
    %5 = vector.broadcast %4 : vector<1x64xf32> to vector<8x64xf32>
    %6 = arith.addf %3, %5 : vector<8x64xf32>
    %c0_5 = arith.constant 0 : index
    %c0_6 = arith.constant 0 : index
    %7 = vector.load %arg5[%c0_5, %c0_6] : memref<8x64xf32, #tpu.memory_space<vmem>>, vector<8x64xf32>
    tpu.vector_store %arg5[%c0_5, %c0_6], %6 {strides = array<i32>} : memref<8x64xf32, #tpu.memory_space<vmem>>, vector<8x64xf32>,
    return
  }
  func.func @transform_0(%arg0: i32, %arg1: i32) -> (i32, i32) {
    %c0_i32 = arith.constant 0 : i32
    %c0_i32_0 = arith.constant 0 : i32
    return %arg0, %c0_i32 : i32, i32
  }
  func.func @transform_1(%arg0: i32, %arg1: i32) -> (i32, i32) {
    %c0_i32 = arith.constant 0 : i32
    %c0_i32_0 = arith.constant 0 : i32
    return %c0_i32, %arg1 : i32, i32
  }
  func.func @transform_2(%arg0: i32, %arg1: i32) -> (i32, i32) {
    %c0_i32 = arith.constant 0 : i32
    %c0_i32_0 = arith.constant 0 : i32
    return %c0_i32, %arg1 : i32, i32
  }
  func.func @transform_3(%arg0: i32, %arg1: i32) -> (i32, i32) {
    %c0_i32 = arith.constant 0 : i32
    return %arg0, %arg1 : i32, i32
  }
}

module attributes {stable_mosaic.version = 11 : i64} {
  func.func @_attention_kernel(%arg0: i32, %arg1: memref<1x5x192xbf16, #tpu.memory_space<vmem>>, %arg2: memref<1x5x64xbf16, #tpu.memory_space<vmem>>) attributes {dimension_semantics = [#tpu.dimension_semantics<parallel>], iteration_bounds = array<i64: 2>, scalar_prefetch = 0 : i64, scratch_operands = 0 : i64, tpu.core_type = #tpu.core_type<tc>, window_params = [{transform_indices = @transform_0, window_bounds = array<i64: 1, 5, 192>}, {transform_indices = @transform_1, window_bounds = array<i64: 1, 5, 64>}]} {
    %c0 = arith.constant 0 : index
    %c0_0 = arith.constant 0 : index
    %c0_1 = arith.constant 0 : index
    %0 = vector.load %arg1[%c0, %c0_0, %c0_1] : memref<1x5x192xbf16, #tpu.memory_space<vmem>>, vector<1x5x192xbf16>
    %1 = vector.shape_cast %0 : vector<1x5x192xbf16> to vector<5x192xbf16>
    %2 = vector.extract_strided_slice %1 {offsets = [0, 0], sizes = [5, 16], strides = [1, 1]} : vector<5x192xbf16> to vector<5x16xbf16>
    %3 = vector.extract_strided_slice %1 {offsets = [0, 64], sizes = [5, 16], strides = [1, 1]} : vector<5x192xbf16> to vector<5x16xbf16>
    %4 = vector.extract_strided_slice %1 {offsets = [0, 128], sizes = [5, 16], strides = [1, 1]} : vector<5x192xbf16> to vector<5x16xbf16>
    %cst = arith.constant dense<0.000000e+00> : vector<5x5xf32>
    %5 = tpu.matmul %2, %3, %cst {dimension_numbers = #tpu.dot_dimension_numbers<[1], [1], [0], [0], [0, 0, 1, 0], [], []>} : vector<5x16xbf16>, vector<5x16xbf16>, vector<5x5xf32> -> vector<5x5xf32>
    %cst_2 = arith.constant dense<0xFF800000> : vector<5xf32>
    %6 = vector.multi_reduction <maximumf>, %5, %cst_2 [1] : vector<5x5xf32> to vector<5xf32>
    %7 = vector.shape_cast %6 : vector<5xf32> to vector<5x1xf32>
    %8 = vector.broadcast %7 : vector<5x1xf32> to vector<5x5xf32>
    %9 = arith.subf %5, %8 : vector<5x5xf32>
    %10 = math.exp %9 : vector<5x5xf32>
    %cst_3 = arith.constant dense<0.000000e+00> : vector<5xf32>
    %11 = vector.multi_reduction <add>, %10, %cst_3 [1] : vector<5x5xf32> to vector<5xf32>
    %12 = vector.shape_cast %11 : vector<5xf32> to vector<5x1xf32>
    %13 = tpu.reciprocal %12 {approx = true} : vector<5x1xf32> -> vector<5x1xf32>
    %14 = vector.broadcast %13 : vector<5x1xf32> to vector<5x5xf32>
    %15 = arith.mulf %10, %14 : vector<5x5xf32>
    %16 = arith.truncf %15 : vector<5x5xf32> to vector<5x5xbf16>
    %cst_4 = arith.constant dense<0.000000e+00> : vector<5x16xf32>
    %17 = tpu.matmul %16, %4, %cst_4 {dimension_numbers = #tpu.dot_dimension_numbers<[1], [0], [0], [1], [0, 0, 1, 1], [], []>} : vector<5x5xbf16>, vector<5x16xbf16>, vector<5x16xf32> -> vector<5x16xf32>
    %18 = vector.extract_strided_slice %1 {offsets = [0, 16], sizes = [5, 16], strides = [1, 1]} : vector<5x192xbf16> to vector<5x16xbf16>
    %19 = vector.extract_strided_slice %1 {offsets = [0, 80], sizes = [5, 16], strides = [1, 1]} : vector<5x192xbf16> to vector<5x16xbf16>
    %20 = vector.extract_strided_slice %1 {offsets = [0, 144], sizes = [5, 16], strides = [1, 1]} : vector<5x192xbf16> to vector<5x16xbf16>
    %cst_5 = arith.constant dense<0.000000e+00> : vector<5x5xf32>
    %21 = tpu.matmul %18, %19, %cst_5 {dimension_numbers = #tpu.dot_dimension_numbers<[1], [1], [0], [0], [0, 0, 1, 0], [], []>} : vector<5x16xbf16>, vector<5x16xbf16>, vector<5x5xf32> -> vector<5x5xf32>
    %cst_6 = arith.constant dense<0xFF800000> : vector<5xf32>
    %22 = vector.multi_reduction <maximumf>, %21, %cst_6 [1] : vector<5x5xf32> to vector<5xf32>
    %23 = vector.shape_cast %22 : vector<5xf32> to vector<5x1xf32>
    %24 = vector.broadcast %23 : vector<5x1xf32> to vector<5x5xf32>
    %25 = arith.subf %21, %24 : vector<5x5xf32>
    %26 = math.exp %25 : vector<5x5xf32>
    %cst_7 = arith.constant dense<0.000000e+00> : vector<5xf32>
    %27 = vector.multi_reduction <add>, %26, %cst_7 [1] : vector<5x5xf32> to vector<5xf32>
    %28 = vector.shape_cast %27 : vector<5xf32> to vector<5x1xf32>
    %29 = tpu.reciprocal %28 {approx = true} : vector<5x1xf32> -> vector<5x1xf32>
    %30 = vector.broadcast %29 : vector<5x1xf32> to vector<5x5xf32>
    %31 = arith.mulf %26, %30 : vector<5x5xf32>
    %32 = arith.truncf %31 : vector<5x5xf32> to vector<5x5xbf16>
    %cst_8 = arith.constant dense<0.000000e+00> : vector<5x16xf32>
    %33 = tpu.matmul %32, %20, %cst_8 {dimension_numbers = #tpu.dot_dimension_numbers<[1], [0], [0], [1], [0, 0, 1, 1], [], []>} : vector<5x5xbf16>, vector<5x16xbf16>, vector<5x16xf32> -> vector<5x16xf32>
    %34 = vector.extract_strided_slice %1 {offsets = [0, 32], sizes = [5, 16], strides = [1, 1]} : vector<5x192xbf16> to vector<5x16xbf16>
    %35 = vector.extract_strided_slice %1 {offsets = [0, 96], sizes = [5, 16], strides = [1, 1]} : vector<5x192xbf16> to vector<5x16xbf16>
    %36 = vector.extract_strided_slice %1 {offsets = [0, 160], sizes = [5, 16], strides = [1, 1]} : vector<5x192xbf16> to vector<5x16xbf16>
    %cst_9 = arith.constant dense<0.000000e+00> : vector<5x5xf32>
    %37 = tpu.matmul %34, %35, %cst_9 {dimension_numbers = #tpu.dot_dimension_numbers<[1], [1], [0], [0], [0, 0, 1, 0], [], []>} : vector<5x16xbf16>, vector<5x16xbf16>, vector<5x5xf32> -> vector<5x5xf32>
    %cst_10 = arith.constant dense<0xFF800000> : vector<5xf32>
    %38 = vector.multi_reduction <maximumf>, %37, %cst_10 [1] : vector<5x5xf32> to vector<5xf32>
    %39 = vector.shape_cast %38 : vector<5xf32> to vector<5x1xf32>
    %40 = vector.broadcast %39 : vector<5x1xf32> to vector<5x5xf32>
    %41 = arith.subf %37, %40 : vector<5x5xf32>
    %42 = math.exp %41 : vector<5x5xf32>
    %cst_11 = arith.constant dense<0.000000e+00> : vector<5xf32>
    %43 = vector.multi_reduction <add>, %42, %cst_11 [1] : vector<5x5xf32> to vector<5xf32>
    %44 = vector.shape_cast %43 : vector<5xf32> to vector<5x1xf32>
    %45 = tpu.reciprocal %44 {approx = true} : vector<5x1xf32> -> vector<5x1xf32>
    %46 = vector.broadcast %45 : vector<5x1xf32> to vector<5x5xf32>
    %47 = arith.mulf %42, %46 : vector<5x5xf32>
    %48 = arith.truncf %47 : vector<5x5xf32> to vector<5x5xbf16>
    %cst_12 = arith.constant dense<0.000000e+00> : vector<5x16xf32>
    %49 = tpu.matmul %48, %36, %cst_12 {dimension_numbers = #tpu.dot_dimension_numbers<[1], [0], [0], [1], [0, 0, 1, 1], [], []>} : vector<5x5xbf16>, vector<5x16xbf16>, vector<5x16xf32> -> vector<5x16xf32>
    %50 = vector.extract_strided_slice %1 {offsets = [0, 48], sizes = [5, 16], strides = [1, 1]} : vector<5x192xbf16> to vector<5x16xbf16>
    %51 = vector.extract_strided_slice %1 {offsets = [0, 112], sizes = [5, 16], strides = [1, 1]} : vector<5x192xbf16> to vector<5x16xbf16>
    %52 = vector.extract_strided_slice %1 {offsets = [0, 176], sizes = [5, 16], strides = [1, 1]} : vector<5x192xbf16> to vector<5x16xbf16>
    %cst_13 = arith.constant dense<0.000000e+00> : vector<5x5xf32>
    %53 = tpu.matmul %50, %51, %cst_13 {dimension_numbers = #tpu.dot_dimension_numbers<[1], [1], [0], [0], [0, 0, 1, 0], [], []>} : vector<5x16xbf16>, vector<5x16xbf16>, vector<5x5xf32> -> vector<5x5xf32>
    %cst_14 = arith.constant dense<0xFF800000> : vector<5xf32>
    %54 = vector.multi_reduction <maximumf>, %53, %cst_14 [1] : vector<5x5xf32> to vector<5xf32>
    %55 = vector.shape_cast %54 : vector<5xf32> to vector<5x1xf32>
    %56 = vector.broadcast %55 : vector<5x1xf32> to vector<5x5xf32>
    %57 = arith.subf %53, %56 : vector<5x5xf32>
    %58 = math.exp %57 : vector<5x5xf32>
    %cst_15 = arith.constant dense<0.000000e+00> : vector<5xf32>
    %59 = vector.multi_reduction <add>, %58, %cst_15 [1] : vector<5x5xf32> to vector<5xf32>
    %60 = vector.shape_cast %59 : vector<5xf32> to vector<5x1xf32>
    %61 = tpu.reciprocal %60 {approx = true} : vector<5x1xf32> -> vector<5x1xf32>
    %62 = vector.broadcast %61 : vector<5x1xf32> to vector<5x5xf32>
    %63 = arith.mulf %58, %62 : vector<5x5xf32>
    %64 = arith.truncf %63 : vector<5x5xf32> to vector<5x5xbf16>
    %cst_16 = arith.constant dense<0.000000e+00> : vector<5x16xf32>
    %65 = tpu.matmul %64, %52, %cst_16 {dimension_numbers = #tpu.dot_dimension_numbers<[1], [0], [0], [1], [0, 0, 1, 1], [], []>} : vector<5x5xbf16>, vector<5x16xbf16>, vector<5x16xf32> -> vector<5x16xf32>
    %66 = tpu.concatenate %17, %33, %49, %65 in 1 : vector<5x16xf32>, vector<5x16xf32>, vector<5x16xf32>, vector<5x16xf32> -> vector<5x64xf32>
    %67 = arith.truncf %66 : vector<5x64xf32> to vector<5x64xbf16>
    %c0_17 = arith.constant 0 : index
    %c0_18 = arith.constant 0 : index
    %c0_19 = arith.constant 0 : index
    %68 = vector.load %arg2[%c0_17, %c0_18, %c0_19] : memref<1x5x64xbf16, #tpu.memory_space<vmem>>, vector<1x5x64xbf16>
    %69 = vector.shape_cast %68 : vector<1x5x64xbf16> to vector<5x64xbf16>
    %70 = vector.shape_cast %67 : vector<5x64xbf16> to vector<1x5x64xbf16>
    tpu.vector_store %arg2[%c0_17, %c0_18, %c0_19], %70 {strides = array<i32>} : memref<1x5x64xbf16, #tpu.memory_space<vmem>>, vector<1x5x64xbf16>,
    return
  }
  func.func @transform_0(%arg0: i32) -> (i32, i32, i32) {
    %c0_i32 = arith.constant 0 : i32
    %c0_i32_0 = arith.constant 0 : i32
    %c0_i32_1 = arith.constant 0 : i32
    return %arg0, %c0_i32, %c0_i32_0 : i32, i32, i32
  }
  func.func @transform_1(%arg0: i32) -> (i32, i32, i32) {
    %c0_i32 = arith.constant 0 : i32
    %c0_i32_0 = arith.constant 0 : i32
    %c0_i32_1 = arith.constant 0 : i32
    return %arg0, %c0_i32, %c0_i32_0 : i32, i32, i32
  }
}

module attributes {stable_mosaic.version = 11 : i64} {
  func.func @_ln_linear_kernel(%arg0: i32, %arg1: i32, %arg2: memref<10x64xf32, #tpu.memory_space<vmem>>, %arg3: memref<1x64xf32, #tpu.memory_space<vmem>>, %arg4: memref<1x64xf32, #tpu.memory_space<vmem>>, %arg5: memref<64x192xbf16, #tpu.memory_space<vmem>>, %arg6: memref<1x192xf32, #tpu.memory_space<vmem>>, %arg7: memref<10x192xbf16, #tpu.memory_space<vmem>>, %arg8: memref<10x64xbf16, #tpu.memory_space<vmem>>) attributes {dimension_semantics = [#tpu.dimension_semantics<arbitrary>, #tpu.dimension_semantics<parallel>], iteration_bounds = array<i64: 1, 1>, scalar_prefetch = 0 : i64, scratch_operands = 1 : i64, tpu.core_type = #tpu.core_type<tc>, window_params = [{transform_indices = @transform_0, window_bounds = array<i64: 10, 64>}, {pipeline_mode = #tpu.pipeline_mode<synchronous>, transform_indices = @transform_1, window_bounds = array<i64: 1, 64>}, {pipeline_mode = #tpu.pipeline_mode<synchronous>, transform_indices = @transform_2, window_bounds = array<i64: 1, 64>}, {transform_indices = @transform_3, window_bounds = array<i64: 64, 192>}, {transform_indices = @transform_4, window_bounds = array<i64: 1, 192>}, {transform_indices = @transform_5, window_bounds = array<i64: 10, 192>}]} {
    %c0 = arith.constant 0 : index
    %c0_0 = arith.constant 0 : index
    %0 = vector.load %arg2[%c0, %c0_0] : memref<10x64xf32, #tpu.memory_space<vmem>>, vector<10x64xf32>
    %cst = arith.constant dense<0.000000e+00> : vector<10xf32>
    %1 = vector.multi_reduction <add>, %0, %cst [1] : vector<10x64xf32> to vector<10xf32>
    %2 = vector.shape_cast %1 : vector<10xf32> to vector<10x1xf32>
    %cst_1 = arith.constant 6.400000e+01 : f32
    %3 = vector.broadcast %cst_1 : f32 to vector<10x1xf32>
    %4 = arith.divf %2, %3 : vector<10x1xf32>
    %5 = vector.broadcast %4 : vector<10x1xf32> to vector<10x64xf32>
    %6 = arith.subf %0, %5 : vector<10x64xf32>
    %7 = arith.mulf %6, %6 : vector<10x64xf32>
    %cst_2 = arith.constant dense<0.000000e+00> : vector<10xf32>
    %8 = vector.multi_reduction <add>, %7, %cst_2 [1] : vector<10x64xf32> to vector<10xf32>
    %9 = vector.shape_cast %8 : vector<10xf32> to vector<10x1xf32>
    %cst_3 = arith.constant 6.400000e+01 : f32
    %10 = vector.broadcast %cst_3 : f32 to vector<10x1xf32>
    %11 = arith.divf %9, %10 : vector<10x1xf32>
    %cst_4 = arith.constant 9.99999997E-7 : f32
    %12 = vector.broadcast %cst_4 : f32 to vector<10x1xf32>
    %13 = arith.addf %11, %12 : vector<10x1xf32>
    %14 = math.rsqrt %13 : vector<10x1xf32>
    %15 = vector.broadcast %14 : vector<10x1xf32> to vector<10x64xf32>
    %16 = arith.mulf %6, %15 : vector<10x64xf32>
    %c0_5 = arith.constant 0 : index
    %c0_6 = arith.constant 0 : index
    %17 = vector.load %arg3[%c0_5, %c0_6] : memref<1x64xf32, #tpu.memory_space<vmem>>, vector<1x64xf32>
    %18 = vector.broadcast %17 : vector<1x64xf32> to vector<10x64xf32>
    %19 = arith.mulf %16, %18 : vector<10x64xf32>
    %c0_7 = arith.constant 0 : index
    %c0_8 = arith.constant 0 : index
    %20 = vector.load %arg4[%c0_7, %c0_8] : memref<1x64xf32, #tpu.memory_space<vmem>>, vector<1x64xf32>
    %21 = vector.broadcast %20 : vector<1x64xf32> to vector<10x64xf32>
    %22 = arith.addf %19, %21 : vector<10x64xf32>
    %23 = arith.truncf %22 : vector<10x64xf32> to vector<10x64xbf16>
    %c0_9 = arith.constant 0 : index
    %c0_10 = arith.constant 0 : index
    %24 = vector.load %arg5[%c0_9, %c0_10] : memref<64x192xbf16, #tpu.memory_space<vmem>>, vector<64x192xbf16>
    %cst_11 = arith.constant dense<0.000000e+00> : vector<10x192xf32>
    %25 = tpu.matmul %23, %24, %cst_11 {dimension_numbers = #tpu.dot_dimension_numbers<[1], [0], [0], [1], [0, 0, 1, 1], [], []>} : vector<10x64xbf16>, vector<64x192xbf16>, vector<10x192xf32> -> vector<10x192xf32>
    %c0_12 = arith.constant 0 : index
    %c0_13 = arith.constant 0 : index
    %26 = vector.load %arg6[%c0_12, %c0_13] : memref<1x192xf32, #tpu.memory_space<vmem>>, vector<1x192xf32>
    %27 = vector.broadcast %26 : vector<1x192xf32> to vector<10x192xf32>
    %28 = arith.addf %25, %27 : vector<10x192xf32>
    %29 = arith.truncf %28 : vector<10x192xf32> to vector<10x192xbf16>
    %c0_14 = arith.constant 0 : index
    %c0_15 = arith.constant 0 : index
    %30 = vector.load %arg7[%c0_14, %c0_15] : memref<10x192xbf16, #tpu.memory_space<vmem>>, vector<10x192xbf16>
    tpu.vector_store %arg7[%c0_14, %c0_15], %29 {strides = array<i32>} : memref<10x192xbf16, #tpu.memory_space<vmem>>, vector<10x192xbf16>,
    return
  }
  func.func @transform_0(%arg0: i32, %arg1: i32) -> (i32, i32) {
    %c0_i32 = arith.constant 0 : i32
    %c0_i32_0 = arith.constant 0 : i32
    return %arg0, %c0_i32 : i32, i32
  }
  func.func @transform_1(%arg0: i32, %arg1: i32) -> (i32, i32) {
    %c0_i32 = arith.constant 0 : i32
    %c0_i32_0 = arith.constant 0 : i32
    %c0_i32_1 = arith.constant 0 : i32
    return %c0_i32, %c0_i32_0 : i32, i32
  }
  func.func @transform_2(%arg0: i32, %arg1: i32) -> (i32, i32) {
    %c0_i32 = arith.constant 0 : i32
    %c0_i32_0 = arith.constant 0 : i32
    %c0_i32_1 = arith.constant 0 : i32
    return %c0_i32, %c0_i32_0 : i32, i32
  }
  func.func @transform_3(%arg0: i32, %arg1: i32) -> (i32, i32) {
    %c0_i32 = arith.constant 0 : i32
    %c0_i32_0 = arith.constant 0 : i32
    return %c0_i32, %arg1 : i32, i32
  }
  func.func @transform_4(%arg0: i32, %arg1: i32) -> (i32, i32) {
    %c0_i32 = arith.constant 0 : i32
    %c0_i32_0 = arith.constant 0 : i32
    return %c0_i32, %arg1 : i32, i32
  }
  func.func @transform_5(%arg0: i32, %arg1: i32) -> (i32, i32) {
    %c0_i32 = arith.constant 0 : i32
    return %arg0, %arg1 : i32, i32
  }
}

module attributes {stable_mosaic.version = 11 : i64} {
  func.func @_linear_res_kernel(%arg0: i32, %arg1: i32, %arg2: memref<10x64xbf16, #tpu.memory_space<vmem>>, %arg3: memref<64x64xbf16, #tpu.memory_space<vmem>>, %arg4: memref<1x64xf32, #tpu.memory_space<vmem>>, %arg5: memref<10x64xf32, #tpu.memory_space<vmem>>, %arg6: memref<10x64xf32, #tpu.memory_space<vmem>>) attributes {dimension_semantics = [#tpu.dimension_semantics<parallel>, #tpu.dimension_semantics<parallel>], iteration_bounds = array<i64: 1, 1>, scalar_prefetch = 0 : i64, scratch_operands = 0 : i64, tpu.core_type = #tpu.core_type<tc>, window_params = [{transform_indices = @transform_0, window_bounds = array<i64: 10, 64>}, {transform_indices = @transform_1, window_bounds = array<i64: 64, 64>}, {transform_indices = @transform_2, window_bounds = array<i64: 1, 64>}, {transform_indices = @transform_3, window_bounds = array<i64: 10, 64>}, {transform_indices = @transform_4, window_bounds = array<i64: 10, 64>}]} {
    %c0 = arith.constant 0 : index
    %c0_0 = arith.constant 0 : index
    %0 = vector.load %arg2[%c0, %c0_0] : memref<10x64xbf16, #tpu.memory_space<vmem>>, vector<10x64xbf16>
    %c0_1 = arith.constant 0 : index
    %c0_2 = arith.constant 0 : index
    %1 = vector.load %arg3[%c0_1, %c0_2] : memref<64x64xbf16, #tpu.memory_space<vmem>>, vector<64x64xbf16>
    %cst = arith.constant dense<0.000000e+00> : vector<10x64xf32>
    %2 = tpu.matmul %0, %1, %cst {dimension_numbers = #tpu.dot_dimension_numbers<[1], [0], [0], [1], [0, 0, 1, 1], [], []>} : vector<10x64xbf16>, vector<64x64xbf16>, vector<10x64xf32> -> vector<10x64xf32>
    %c0_3 = arith.constant 0 : index
    %c0_4 = arith.constant 0 : index
    %3 = vector.load %arg5[%c0_3, %c0_4] : memref<10x64xf32, #tpu.memory_space<vmem>>, vector<10x64xf32>
    %4 = arith.addf %3, %2 : vector<10x64xf32>
    %c0_5 = arith.constant 0 : index
    %c0_6 = arith.constant 0 : index
    %5 = vector.load %arg4[%c0_5, %c0_6] : memref<1x64xf32, #tpu.memory_space<vmem>>, vector<1x64xf32>
    %6 = vector.broadcast %5 : vector<1x64xf32> to vector<10x64xf32>
    %7 = arith.addf %4, %6 : vector<10x64xf32>
    %c0_7 = arith.constant 0 : index
    %c0_8 = arith.constant 0 : index
    %8 = vector.load %arg6[%c0_7, %c0_8] : memref<10x64xf32, #tpu.memory_space<vmem>>, vector<10x64xf32>
    tpu.vector_store %arg6[%c0_7, %c0_8], %7 {strides = array<i32>} : memref<10x64xf32, #tpu.memory_space<vmem>>, vector<10x64xf32>,
    return
  }
  func.func @transform_0(%arg0: i32, %arg1: i32) -> (i32, i32) {
    %c0_i32 = arith.constant 0 : i32
    %c0_i32_0 = arith.constant 0 : i32
    return %arg0, %c0_i32 : i32, i32
  }
  func.func @transform_1(%arg0: i32, %arg1: i32) -> (i32, i32) {
    %c0_i32 = arith.constant 0 : i32
    %c0_i32_0 = arith.constant 0 : i32
    return %c0_i32, %arg1 : i32, i32
  }
  func.func @transform_2(%arg0: i32, %arg1: i32) -> (i32, i32) {
    %c0_i32 = arith.constant 0 : i32
    %c0_i32_0 = arith.constant 0 : i32
    return %c0_i32, %arg1 : i32, i32
  }
  func.func @transform_3(%arg0: i32, %arg1: i32) -> (i32, i32) {
    %c0_i32 = arith.constant 0 : i32
    return %arg0, %arg1 : i32, i32
  }
  func.func @transform_4(%arg0: i32, %arg1: i32) -> (i32, i32) {
    %c0_i32 = arith.constant 0 : i32
    return %arg0, %arg1 : i32, i32
  }
}

module attributes {stable_mosaic.version = 11 : i64} {
  func.func @_linear_res_kernel(%arg0: i32, %arg1: i32, %arg2: memref<10x256xbf16, #tpu.memory_space<vmem>>, %arg3: memref<256x64xbf16, #tpu.memory_space<vmem>>, %arg4: memref<1x64xf32, #tpu.memory_space<vmem>>, %arg5: memref<10x64xf32, #tpu.memory_space<vmem>>, %arg6: memref<10x64xf32, #tpu.memory_space<vmem>>) attributes {dimension_semantics = [#tpu.dimension_semantics<parallel>, #tpu.dimension_semantics<parallel>], iteration_bounds = array<i64: 1, 1>, scalar_prefetch = 0 : i64, scratch_operands = 0 : i64, tpu.core_type = #tpu.core_type<tc>, window_params = [{transform_indices = @transform_0, window_bounds = array<i64: 10, 256>}, {transform_indices = @transform_1, window_bounds = array<i64: 256, 64>}, {transform_indices = @transform_2, window_bounds = array<i64: 1, 64>}, {transform_indices = @transform_3, window_bounds = array<i64: 10, 64>}, {transform_indices = @transform_4, window_bounds = array<i64: 10, 64>}]} {
    %c0 = arith.constant 0 : index
    %c0_0 = arith.constant 0 : index
    %0 = vector.load %arg2[%c0, %c0_0] : memref<10x256xbf16, #tpu.memory_space<vmem>>, vector<10x256xbf16>
    %c0_1 = arith.constant 0 : index
    %c0_2 = arith.constant 0 : index
    %1 = vector.load %arg3[%c0_1, %c0_2] : memref<256x64xbf16, #tpu.memory_space<vmem>>, vector<256x64xbf16>
    %cst = arith.constant dense<0.000000e+00> : vector<10x64xf32>
    %2 = tpu.matmul %0, %1, %cst {dimension_numbers = #tpu.dot_dimension_numbers<[1], [0], [0], [1], [0, 0, 1, 1], [], []>} : vector<10x256xbf16>, vector<256x64xbf16>, vector<10x64xf32> -> vector<10x64xf32>
    %c0_3 = arith.constant 0 : index
    %c0_4 = arith.constant 0 : index
    %3 = vector.load %arg5[%c0_3, %c0_4] : memref<10x64xf32, #tpu.memory_space<vmem>>, vector<10x64xf32>
    %4 = arith.addf %3, %2 : vector<10x64xf32>
    %c0_5 = arith.constant 0 : index
    %c0_6 = arith.constant 0 : index
    %5 = vector.load %arg4[%c0_5, %c0_6] : memref<1x64xf32, #tpu.memory_space<vmem>>, vector<1x64xf32>
    %6 = vector.broadcast %5 : vector<1x64xf32> to vector<10x64xf32>
    %7 = arith.addf %4, %6 : vector<10x64xf32>
    %c0_7 = arith.constant 0 : index
    %c0_8 = arith.constant 0 : index
    %8 = vector.load %arg6[%c0_7, %c0_8] : memref<10x64xf32, #tpu.memory_space<vmem>>, vector<10x64xf32>
    tpu.vector_store %arg6[%c0_7, %c0_8], %7 {strides = array<i32>} : memref<10x64xf32, #tpu.memory_space<vmem>>, vector<10x64xf32>,
    return
  }
  func.func @transform_0(%arg0: i32, %arg1: i32) -> (i32, i32) {
    %c0_i32 = arith.constant 0 : i32
    %c0_i32_0 = arith.constant 0 : i32
    return %arg0, %c0_i32 : i32, i32
  }
  func.func @transform_1(%arg0: i32, %arg1: i32) -> (i32, i32) {
    %c0_i32 = arith.constant 0 : i32
    %c0_i32_0 = arith.constant 0 : i32
    return %c0_i32, %arg1 : i32, i32
  }
  func.func @transform_2(%arg0: i32, %arg1: i32) -> (i32, i32) {
    %c0_i32 = arith.constant 0 : i32
    %c0_i32_0 = arith.constant 0 : i32
    return %c0_i32, %arg1 : i32, i32
  }
  func.func @transform_3(%arg0: i32, %arg1: i32) -> (i32, i32) {
    %c0_i32 = arith.constant 0 : i32
    return %arg0, %arg1 : i32, i32
  }
  func.func @transform_4(%arg0: i32, %arg1: i32) -> (i32, i32) {
    %c0_i32 = arith.constant 0 : i32
    return %arg0, %arg1 : i32, i32
  }
}

module attributes {stable_mosaic.version = 11 : i64} {
  func.func @_ln_linear_kernel(%arg0: i32, %arg1: i32, %arg2: memref<10x64xf32, #tpu.memory_space<vmem>>, %arg3: memref<1x64xf32, #tpu.memory_space<vmem>>, %arg4: memref<1x64xf32, #tpu.memory_space<vmem>>, %arg5: memref<64x128xbf16, #tpu.memory_space<vmem>>, %arg6: memref<1x128xf32, #tpu.memory_space<vmem>>, %arg7: memref<10x128xbf16, #tpu.memory_space<vmem>>, %arg8: memref<10x64xbf16, #tpu.memory_space<vmem>>) attributes {dimension_semantics = [#tpu.dimension_semantics<arbitrary>, #tpu.dimension_semantics<parallel>], iteration_bounds = array<i64: 1, 2>, scalar_prefetch = 0 : i64, scratch_operands = 1 : i64, tpu.core_type = #tpu.core_type<tc>, window_params = [{transform_indices = @transform_0, window_bounds = array<i64: 10, 64>}, {pipeline_mode = #tpu.pipeline_mode<synchronous>, transform_indices = @transform_1, window_bounds = array<i64: 1, 64>}, {pipeline_mode = #tpu.pipeline_mode<synchronous>, transform_indices = @transform_2, window_bounds = array<i64: 1, 64>}, {transform_indices = @transform_3, window_bounds = array<i64: 64, 128>}, {transform_indices = @transform_4, window_bounds = array<i64: 1, 128>}, {transform_indices = @transform_5, window_bounds = array<i64: 10, 128>}]} {
    %c0 = arith.constant 0 : index
    %c0_0 = arith.constant 0 : index
    %0 = vector.load %arg2[%c0, %c0_0] : memref<10x64xf32, #tpu.memory_space<vmem>>, vector<10x64xf32>
    %cst = arith.constant dense<0.000000e+00> : vector<10xf32>
    %1 = vector.multi_reduction <add>, %0, %cst [1] : vector<10x64xf32> to vector<10xf32>
    %2 = vector.shape_cast %1 : vector<10xf32> to vector<10x1xf32>
    %cst_1 = arith.constant 6.400000e+01 : f32
    %3 = vector.broadcast %cst_1 : f32 to vector<10x1xf32>
    %4 = arith.divf %2, %3 : vector<10x1xf32>
    %5 = vector.broadcast %4 : vector<10x1xf32> to vector<10x64xf32>
    %6 = arith.subf %0, %5 : vector<10x64xf32>
    %7 = arith.mulf %6, %6 : vector<10x64xf32>
    %cst_2 = arith.constant dense<0.000000e+00> : vector<10xf32>
    %8 = vector.multi_reduction <add>, %7, %cst_2 [1] : vector<10x64xf32> to vector<10xf32>
    %9 = vector.shape_cast %8 : vector<10xf32> to vector<10x1xf32>
    %cst_3 = arith.constant 6.400000e+01 : f32
    %10 = vector.broadcast %cst_3 : f32 to vector<10x1xf32>
    %11 = arith.divf %9, %10 : vector<10x1xf32>
    %cst_4 = arith.constant 9.99999997E-7 : f32
    %12 = vector.broadcast %cst_4 : f32 to vector<10x1xf32>
    %13 = arith.addf %11, %12 : vector<10x1xf32>
    %14 = math.rsqrt %13 : vector<10x1xf32>
    %15 = vector.broadcast %14 : vector<10x1xf32> to vector<10x64xf32>
    %16 = arith.mulf %6, %15 : vector<10x64xf32>
    %c0_5 = arith.constant 0 : index
    %c0_6 = arith.constant 0 : index
    %17 = vector.load %arg3[%c0_5, %c0_6] : memref<1x64xf32, #tpu.memory_space<vmem>>, vector<1x64xf32>
    %18 = vector.broadcast %17 : vector<1x64xf32> to vector<10x64xf32>
    %19 = arith.mulf %16, %18 : vector<10x64xf32>
    %c0_7 = arith.constant 0 : index
    %c0_8 = arith.constant 0 : index
    %20 = vector.load %arg4[%c0_7, %c0_8] : memref<1x64xf32, #tpu.memory_space<vmem>>, vector<1x64xf32>
    %21 = vector.broadcast %20 : vector<1x64xf32> to vector<10x64xf32>
    %22 = arith.addf %19, %21 : vector<10x64xf32>
    %23 = arith.truncf %22 : vector<10x64xf32> to vector<10x64xbf16>
    %c0_9 = arith.constant 0 : index
    %c0_10 = arith.constant 0 : index
    %24 = vector.load %arg5[%c0_9, %c0_10] : memref<64x128xbf16, #tpu.memory_space<vmem>>, vector<64x128xbf16>
    %cst_11 = arith.constant dense<0.000000e+00> : vector<10x128xf32>
    %25 = tpu.matmul %23, %24, %cst_11 {dimension_numbers = #tpu.dot_dimension_numbers<[1], [0], [0], [1], [0, 0, 1, 1], [], []>} : vector<10x64xbf16>, vector<64x128xbf16>, vector<10x128xf32> -> vector<10x128xf32>
    %c0_12 = arith.constant 0 : index
    %c0_13 = arith.constant 0 : index
    %26 = vector.load %arg6[%c0_12, %c0_13] : memref<1x128xf32, #tpu.memory_space<vmem>>, vector<1x128xf32>
    %27 = vector.broadcast %26 : vector<1x128xf32> to vector<10x128xf32>
    %28 = arith.addf %25, %27 : vector<10x128xf32>
    %cst_14 = arith.constant 5.000000e-01 : f32
    %29 = vector.broadcast %cst_14 : f32 to vector<10x128xf32>
    %30 = arith.mulf %29, %28 : vector<10x128xf32>
    %cst_15 = arith.constant 4.471500e-02 : f32
    %31 = vector.broadcast %cst_15 : f32 to vector<10x128xf32>
    %32 = arith.mulf %31, %28 : vector<10x128xf32>
    %33 = arith.mulf %32, %28 : vector<10x128xf32>
    %34 = arith.mulf %33, %28 : vector<10x128xf32>
    %35 = arith.addf %28, %34 : vector<10x128xf32>
    %cst_16 = arith.constant 0.797884583 : f32
    %36 = vector.broadcast %cst_16 : f32 to vector<10x128xf32>
    %37 = arith.mulf %36, %35 : vector<10x128xf32>
    %38 = math.tanh %37 : vector<10x128xf32>
    %cst_17 = arith.constant 1.000000e+00 : f32
    %39 = vector.broadcast %cst_17 : f32 to vector<10x128xf32>
    %40 = arith.addf %39, %38 : vector<10x128xf32>
    %41 = arith.mulf %30, %40 : vector<10x128xf32>
    %42 = arith.truncf %41 : vector<10x128xf32> to vector<10x128xbf16>
    %c0_18 = arith.constant 0 : index
    %c0_19 = arith.constant 0 : index
    %43 = vector.load %arg7[%c0_18, %c0_19] : memref<10x128xbf16, #tpu.memory_space<vmem>>, vector<10x128xbf16>
    tpu.vector_store %arg7[%c0_18, %c0_19], %42 {strides = array<i32>} : memref<10x128xbf16, #tpu.memory_space<vmem>>, vector<10x128xbf16>,
    return
  }
  func.func @transform_0(%arg0: i32, %arg1: i32) -> (i32, i32) {
    %c0_i32 = arith.constant 0 : i32
    %c0_i32_0 = arith.constant 0 : i32
    return %arg0, %c0_i32 : i32, i32
  }
  func.func @transform_1(%arg0: i32, %arg1: i32) -> (i32, i32) {
    %c0_i32 = arith.constant 0 : i32
    %c0_i32_0 = arith.constant 0 : i32
    %c0_i32_1 = arith.constant 0 : i32
    return %c0_i32, %c0_i32_0 : i32, i32
  }
  func.func @transform_2(%arg0: i32, %arg1: i32) -> (i32, i32) {
    %c0_i32 = arith.constant 0 : i32
    %c0_i32_0 = arith.constant 0 : i32
    %c0_i32_1 = arith.constant 0 : i32
    return %c0_i32, %c0_i32_0 : i32, i32
  }
  func.func @transform_3(%arg0: i32, %arg1: i32) -> (i32, i32) {
    %c0_i32 = arith.constant 0 : i32
    %c0_i32_0 = arith.constant 0 : i32
    return %c0_i32, %arg1 : i32, i32
  }
  func.func @transform_4(%arg0: i32, %arg1: i32) -> (i32, i32) {
    %c0_i32 = arith.constant 0 : i32
    %c0_i32_0 = arith.constant 0 : i32
    return %c0_i32, %arg1 : i32, i32
  }
  func.func @transform_5(%arg0: i32, %arg1: i32) -> (i32, i32) {
    %c0_i32 = arith.constant 0 : i32
    return %arg0, %arg1 : i32, i32
  }
}

module attributes {stable_mosaic.version = 11 : i64} {
  func.func @_ln_linear_kernel(%arg0: i32, %arg1: i32, %arg2: memref<2x64xf32, #tpu.memory_space<vmem>>, %arg3: memref<1x64xf32, #tpu.memory_space<vmem>>, %arg4: memref<1x64xf32, #tpu.memory_space<vmem>>, %arg5: memref<64x16xbf16, #tpu.memory_space<vmem>>, %arg6: memref<1x16xf32, #tpu.memory_space<vmem>>, %arg7: memref<2x16xf32, #tpu.memory_space<vmem>>, %arg8: memref<2x64xbf16, #tpu.memory_space<vmem>>) attributes {dimension_semantics = [#tpu.dimension_semantics<arbitrary>, #tpu.dimension_semantics<parallel>], iteration_bounds = array<i64: 1, 1>, scalar_prefetch = 0 : i64, scratch_operands = 1 : i64, tpu.core_type = #tpu.core_type<tc>, window_params = [{transform_indices = @transform_0, window_bounds = array<i64: 2, 64>}, {pipeline_mode = #tpu.pipeline_mode<synchronous>, transform_indices = @transform_1, window_bounds = array<i64: 1, 64>}, {pipeline_mode = #tpu.pipeline_mode<synchronous>, transform_indices = @transform_2, window_bounds = array<i64: 1, 64>}, {transform_indices = @transform_3, window_bounds = array<i64: 64, 16>}, {transform_indices = @transform_4, window_bounds = array<i64: 1, 16>}, {transform_indices = @transform_5, window_bounds = array<i64: 2, 16>}]} {
    %c0 = arith.constant 0 : index
    %c0_0 = arith.constant 0 : index
    %0 = vector.load %arg2[%c0, %c0_0] : memref<2x64xf32, #tpu.memory_space<vmem>>, vector<2x64xf32>
    %cst = arith.constant dense<0.000000e+00> : vector<2xf32>
    %1 = vector.multi_reduction <add>, %0, %cst [1] : vector<2x64xf32> to vector<2xf32>
    %2 = vector.shape_cast %1 : vector<2xf32> to vector<2x1xf32>
    %cst_1 = arith.constant 6.400000e+01 : f32
    %3 = vector.broadcast %cst_1 : f32 to vector<2x1xf32>
    %4 = arith.divf %2, %3 : vector<2x1xf32>
    %5 = vector.broadcast %4 : vector<2x1xf32> to vector<2x64xf32>
    %6 = arith.subf %0, %5 : vector<2x64xf32>
    %7 = arith.mulf %6, %6 : vector<2x64xf32>
    %cst_2 = arith.constant dense<0.000000e+00> : vector<2xf32>
    %8 = vector.multi_reduction <add>, %7, %cst_2 [1] : vector<2x64xf32> to vector<2xf32>
    %9 = vector.shape_cast %8 : vector<2xf32> to vector<2x1xf32>
    %cst_3 = arith.constant 6.400000e+01 : f32
    %10 = vector.broadcast %cst_3 : f32 to vector<2x1xf32>
    %11 = arith.divf %9, %10 : vector<2x1xf32>
    %cst_4 = arith.constant 9.99999997E-7 : f32
    %12 = vector.broadcast %cst_4 : f32 to vector<2x1xf32>
    %13 = arith.addf %11, %12 : vector<2x1xf32>
    %14 = math.rsqrt %13 : vector<2x1xf32>
    %15 = vector.broadcast %14 : vector<2x1xf32> to vector<2x64xf32>
    %16 = arith.mulf %6, %15 : vector<2x64xf32>
    %c0_5 = arith.constant 0 : index
    %c0_6 = arith.constant 0 : index
    %17 = vector.load %arg3[%c0_5, %c0_6] : memref<1x64xf32, #tpu.memory_space<vmem>>, vector<1x64xf32>
    %18 = vector.broadcast %17 : vector<1x64xf32> to vector<2x64xf32>
    %19 = arith.mulf %16, %18 : vector<2x64xf32>
    %c0_7 = arith.constant 0 : index
    %c0_8 = arith.constant 0 : index
    %20 = vector.load %arg4[%c0_7, %c0_8] : memref<1x64xf32, #tpu.memory_space<vmem>>, vector<1x64xf32>
    %21 = vector.broadcast %20 : vector<1x64xf32> to vector<2x64xf32>
    %22 = arith.addf %19, %21 : vector<2x64xf32>
    %23 = arith.truncf %22 : vector<2x64xf32> to vector<2x64xbf16>
    %c0_9 = arith.constant 0 : index
    %c0_10 = arith.constant 0 : index
    %24 = vector.load %arg5[%c0_9, %c0_10] : memref<64x16xbf16, #tpu.memory_space<vmem>>, vector<64x16xbf16>
    %cst_11 = arith.constant dense<0.000000e+00> : vector<2x16xf32>
    %25 = tpu.matmul %23, %24, %cst_11 {dimension_numbers = #tpu.dot_dimension_numbers<[1], [0], [0], [1], [0, 0, 1, 1], [], []>} : vector<2x64xbf16>, vector<64x16xbf16>, vector<2x16xf32> -> vector<2x16xf32>
    %c0_12 = arith.constant 0 : index
    %c0_13 = arith.constant 0 : index
    %26 = vector.load %arg6[%c0_12, %c0_13] : memref<1x16xf32, #tpu.memory_space<vmem>>, vector<1x16xf32>
    %27 = vector.broadcast %26 : vector<1x16xf32> to vector<2x16xf32>
    %28 = arith.addf %25, %27 : vector<2x16xf32>
    %c0_14 = arith.constant 0 : index
    %c0_15 = arith.constant 0 : index
    %29 = vector.load %arg7[%c0_14, %c0_15] : memref<2x16xf32, #tpu.memory_space<vmem>>, vector<2x16xf32>
    tpu.vector_store %arg7[%c0_14, %c0_15], %28 {strides = array<i32>} : memref<2x16xf32, #tpu.memory_space<vmem>>, vector<2x16xf32>,
    return
  }
  func.func @transform_0(%arg0: i32, %arg1: i32) -> (i32, i32) {
    %c0_i32 = arith.constant 0 : i32
    %c0_i32_0 = arith.constant 0 : i32
    return %arg0, %c0_i32 : i32, i32
  }
  func.func @transform_1(%arg0: i32, %arg1: i32) -> (i32, i32) {
    %c0_i32 = arith.constant 0 : i32
    %c0_i32_0 = arith.constant 0 : i32
    %c0_i32_1 = arith.constant 0 : i32
    return %c0_i32, %c0_i32_0 : i32, i32
  }
  func.func @transform_2(%arg0: i32, %arg1: i32) -> (i32, i32) {
    %c0_i32 = arith.constant 0 : i32
    %c0_i32_0 = arith.constant 0 : i32
    %c0_i32_1 = arith.constant 0 : i32
    return %c0_i32, %c0_i32_0 : i32, i32
  }
  func.func @transform_3(%arg0: i32, %arg1: i32) -> (i32, i32) {
    %c0_i32 = arith.constant 0 : i32
    %c0_i32_0 = arith.constant 0 : i32
    return %c0_i32, %arg1 : i32, i32
  }
  func.func @transform_4(%arg0: i32, %arg1: i32) -> (i32, i32) {
    %c0_i32 = arith.constant 0 : i32
    %c0_i32_0 = arith.constant 0 : i32
    return %c0_i32, %arg1 : i32, i32
  }
  func.func @transform_5(%arg0: i32, %arg1: i32) -> (i32, i32) {
    %c0_i32 = arith.constant 0 : i32
    return %arg0, %arg1 : i32, i32
  }
}

</mosaic_0001>

<bundles_post_ra>
// kernel: vit_forward.14
= control target key start
LH: loop header
LB: loop body
LE: loop exit
PB: predicated region body
PF: predicated region fallthrough
CT: control target
= control target key end

     0   :  { %s791_s6 = smov 0   ;;  %s884_s0 = inlined_call_operand.vmem [shape: bf16[2,5,192], index: 0, kind: input, shape index: {}]   ;;  %s885_s1 = inlined_call_operand.vmem [shape: bf16[2,5,64], index: 1, kind: output, shape index: {}]  }
   0x1 LB: > { %s642_s7 = sadd.s32 4294967295, %s769_s6   ;;  %p646_p0 = scmp.ge.s32.totalorder %s769_s6, 1  ;;  %s769_s6 = sphi %s791_s6, %s11_s6  }
   0x2   : > { %p87_p1 = scmp.lt.s32.totalorder %s769_s6, 3 }
   0x4   : > { %p88_p2 = pnand %p646_p0, %p87_p1 }
   0x5   : > { %p106_p3 = scmp.lt.s32.totalorder (!%p88_p2), %s642_s7, 1  ;;  %v771_v0 = vmov (!%p88_p2), 0.0   ;;  %vm772_vm0 = vmmov (!%p88_p2), 0   ;;  %s773_s12 = smov (!%p88_p2), 64   ;;  %vm122_vm1 = vcmask (!%p88_p2), 130048   ;;  %vm169_vm2 = vcmask (!%p88_p2), 36864  }
   0x6   : > { %91 = sbr.rel (%p88_p2) target bundleno = 1554 (0x612), region = 24  ;;  %679 = vmatprep.subr.bf16.mxu0 (!%p88_p2), %v771_v0  ;;  %681 = vmatprep.mubr.msk.bf16.mxu0 (!%p88_p2), %vm772_vm0, %v771_v0  ;;  %s774_s13 = smov (!%p88_p2), 48   ;;  %vm188_vm3 = vcmask (!%p88_p2), 1041408   ;;  %vm189_vm4 = vcmask (!%p88_p2), 1042432   ;;  %v776_v16 = vmov (!%p88_p2), 65535   ;;  %vm184_vm5 = vcmask (!%p88_p2), 39936  }
   0x7   : > { %685 = vmatprep.subr.bf16.mxu1 (!%p88_p2), %v771_v0  ;;  %687 = vmatprep.mubr.msk.bf16.mxu1 (!%p88_p2), %vm772_vm0, %v771_v0  ;;  %s775_s14 = smov (!%p88_p2), 80   ;;  %v190_v17 = vsel (!%p88_p2), %vm188_vm3, 4294967295, %v776_v16  ;;  %s777_s15 = smov (!%p88_p2), 112   ;;  %vm578_vm6 = vcmask (!%p88_p2), 261120   ;;  %vm580_vm7 = vcmask (!%p88_p2), 392192   ;;  %vm583_vm8 = vcmask (!%p88_p2), 518144  }
   0x8   : > { %v822_v18 = vsel (!%p88_p2), %vm189_vm4, %v190_v17, 0  ;;  %s778_s16 = smov (!%p88_p2), 32   ;;  %s779_s17 = smov (!%p88_p2), 96   ;;  %vm584_vm9 = vsmask.f32 (!%p88_p2), 2304 }
   0x9   : > { %s780_s18 = smov (!%p88_p2), 16   ;;  %vm585_vm10 = vmand (!%p88_p2), %vm583_vm8, %vm584_vm9 }
   0xd   : > { %s887_s7 = smov (!%p106_p3, %s642_s7), 1 }
   0xe   : > { %s662_s8 = sshll.u32 %s887_s7, 3  ;;  %s649_s19 = sshll.u32 %s887_s7, 2 }
   0xf   : > { %s110_s11 = scalar_lea.vmem %s884_s0, %s662_s8  ;;  %s114_s22 = scalar_lea.vmem %s885_s1, %s649_s19 }
  0x10   : > { %v116_v1 = vld [vmem:[%s110_s11] sm:$0x77] }
  0x11   : > { %v650_v2 = vcombine.low %v116_v1, %v116_v1  ;;  %v820_v15 = vcombine.high %v116_v1, %v116_v1 }
  0x13   : > { %120 = vrot.lane.b32.xlu0 %v650_v2, %s773_s12  ;;  %237 = vrot.lane.b32.xlu1 %v650_v2, %s774_s13  ;;  %v193_v19 = vand.u32 %v820_v15, %v822_v18 }
  0x15   : > { %686 = vmatpush3.bf16.msra.mxu1 %v193_v19 }
  0x16   : > { %691 = vmatprep.subr.bf16.mxu1 %v771_v0 }
  0x85   : > { %v121_v3 = vpop.permute.xlu0 %120  ;;  %v238_v20 = vpop.permute.xlu1 %237 }
  0x86   : > { %v127_v4 = vsel %vm122_vm1, %v121_v3, 0  ;;  %v243_v27 = vsel %vm122_vm1, %v238_v20, 0 }
  0x87   : > { %680 = vmatpush3.bf16.xpose.msra.mxu0 %v127_v4 }
  0x88   : > { %697 = vmatprep.subr.bf16.mxu0 %v771_v0 }
  0x8e   : > { %682 = vmatmul.mubr.msk.bf16.vlgmr.msra.gmra.mrb[0].mxu0 %vm122_vm1, %v116_v1 }
  0x8f   : > { %699 = vmatprep.mubr.msk.bf16.mxu0 %vm772_vm0, %v771_v0 }
 0x161   : > { %v163_v5 = vpop.f32.mrb[0].mxu0 }
 0x162   : > { %v683_v6 = vpop.f32.mrb[1].mxu0  ;;  %v170_v7 = vsel %vm169_vm2, %v163_v5, -inf }
 0x163   : > { %171 = vmax.xlane.f32.xlu0 %v170_v7  ;;  %v166_v8 = vpop.f32.mrb[2].mxu0 }
 0x164   : > { %v684_v9 = vpop.f32.mrb[3].mxu0 }
 0x179   : > { %455 = vrot.lane.b32.xlu0 %v650_v2, %s775_s14 }
 0x1f0   : > { %v172_v10 = vpop.xlane.xlu0 %171 }
 0x1f1   : > { %v173_v11 = vsub.f32 %v163_v5, %v172_v10 }
 0x1f3   : > { %v174_v12 = vmul.f32 1.442695, %v173_v11 }
 0x1f4   : > { %v456_v32 = vpop.permute.xlu0 %455 }
 0x1f5   : > { %747 = vpow2.f32 %v174_v12 }
 0x1ff   : > { %v748_v13 = vpop.eup %747 }
 0x200   : > { %v176_v14 = vsel %vm169_vm2, %v748_v13, 0.0 }
 0x201   : > { %177 = vadd.xlane.f32.xlu1 %v176_v14 }
 0x212   : > { %235 = vrot.lane.b32.xlu1 %v650_v2, %s777_s15 }
 0x216   : > { %347 = vrot.lane.b32.xlu1 %v650_v2, %s778_s16 }
 0x21a   : > { %345 = vrot.lane.b32.xlu1 %v650_v2, %s779_s17 }
 0x21e   : > { %457 = vrot.lane.b32.xlu1 %v650_v2, %s780_s18 }
 0x28e   : > { %v178_v21 = vpop.xlane.xlu1 %177 }
 0x28f   : > { %749 = vrcp.f32 %v178_v21 }
 0x292   : > { %v236_v22 = vpop.permute.xlu1 %235 }
 0x296   : > { %v348_v26 = vpop.permute.xlu1 %347 }
 0x297   : > { %v353_v29 = vsel %vm122_vm1, %v348_v26, 0 }
 0x299   : > { %v750_v23 = vpop.eup %749 }
 0x29a   : > { %v180_v24 = vmul.f32 %v750_v23, %v748_v13  ;;  %v346_v28 = vpop.permute.xlu1 %345 }
 0x29c   : > { %v181_v25 = vpack.c.bf16 %v180_v24, %v180_v24 }
 0x29e   : > { %688 = vmatmul.mubr.msk.bf16.vlgmr.msra.gmra.mrb[0].mxu1 %vm184_vm5, %v181_v25  ;;  %v458_v30 = vpop.permute.xlu1 %457 }
 0x29f   : > { %692 = vmatpush3.bf16.xpose.msra.mxu1 %v243_v27  ;;  %693 = vmatprep.mubr.msk.bf16.mxu1 %vm772_vm0, %v771_v0  ;;  %v463_v31 = vsel %vm122_vm1, %v458_v30, 0 }
 0x2a0   : > { %703 = vmatprep.subr.bf16.mxu1 %v771_v0 }
 0x2a6   : > { %694 = vmatmul.mubr.msk.bf16.vlgmr.msra.gmra.mrb[4].mxu1 %vm122_vm1, %v236_v22 }
 0x2a7   : > { %704 = vmatpush3.bf16.xpose.msra.mxu1 %v353_v29  ;;  %705 = vmatprep.mubr.msk.bf16.mxu1 %vm772_vm0, %v771_v0 }
 0x2a8   : > { %715 = vmatprep.subr.bf16.mxu1 %v771_v0 }
 0x2ae   : > { %706 = vmatmul.mubr.msk.bf16.vlgmr.msra.gmra.mrb[8].mxu1 %vm122_vm1, %v346_v28 }
 0x2af   : > { %716 = vmatpush3.bf16.xpose.msra.mxu1 %v463_v31  ;;  %717 = vmatprep.mubr.msk.bf16.mxu1 %vm772_vm0, %v771_v0 }
 0x2b6   : > { %718 = vmatmul.mubr.msk.bf16.vlgmr.msra.gmra.mrb[12].mxu1 %vm122_vm1, %v456_v32 }
 0x371   : > { %v846_v33 = vpop.f32.mrb[0].mxu1 }
 0x372   : > { %v689_v34 = vpop.f32.mrb[1].mxu1 }
 0x373   : > { %v232_v35 = vpop.f32.mrb[2].mxu1 }
 0x374   : > { %v690_v36 = vpop.f32.mrb[3].mxu1 }
 0x379   : > { %v279_v37 = vpop.f32.mrb[4].mxu1 }
 0x37a   : > { %v695_v38 = vpop.f32.mrb[5].mxu1  ;;  %v285_v39 = vsel %vm169_vm2, %v279_v37, -inf }
 0x37b   : > { %286 = vmax.xlane.f32.xlu1 %v285_v39  ;;  %v282_v40 = vpop.f32.mrb[6].mxu1  ;;  %v586_v39 = vld [vmem:[%s114_s22] sm:$0x7] }
 0x37c   : > { %v696_v41 = vpop.f32.mrb[7].mxu1 }
 0x381   : > { %v389_v42 = vpop.f32.mrb[8].mxu1 }
 0x382   : > { %v707_v43 = vpop.f32.mrb[9].mxu1  ;;  %v395_v44 = vsel %vm169_vm2, %v389_v42, -inf }
 0x383   : > { %396 = vmax.xlane.f32.xlu0 %v395_v44  ;;  %v392_v45 = vpop.f32.mrb[10].mxu1 }
 0x384   : > { %v708_v46 = vpop.f32.mrb[11].mxu1 }
 0x389   : > { %v499_v47 = vpop.f32.mrb[12].mxu1 }
 0x38a   : > { %v719_v48 = vpop.f32.mrb[13].mxu1  ;;  %v505_v49 = vsel %vm169_vm2, %v499_v47, -inf }
 0x38b   : > { %506 = vmax.xlane.f32.xlu1 %v505_v49  ;;  %v502_v50 = vpop.f32.mrb[14].mxu1 }
 0x38c   : > { %v720_v51 = vpop.f32.mrb[15].mxu1 }
 0x399   : > { %297 = vrot.lane.b32.xlu0 %v820_v15, %s777_s15 }
 0x39c   : > { %407 = vrot.lane.b32.xlu1 %v820_v15, %s779_s17 }
 0x408   : > { %v287_v52 = vpop.xlane.xlu1 %286 }
 0x409   : > { %v288_v53 = vsub.f32 %v279_v37, %v287_v52 }
 0x40b   : > { %v289_v54 = vmul.f32 1.442695, %v288_v53 }
 0x40d   : > { %751 = vpow2.f32 %v289_v54 }
 0x410   : > { %v397_v55 = vpop.xlane.xlu0 %396 }
 0x411   : > { %v398_v56 = vsub.f32 %v389_v42, %v397_v55 }
 0x413   : > { %v399_v57 = vmul.f32 1.442695, %v398_v56 }
 0x414   : > { %v298_v4 = vpop.permute.xlu0 %297 }
 0x415   : > { %753 = vpow2.f32 %v399_v57  ;;  %v303_v5 = vand.u32 %v298_v4, %v822_v18 }
 0x417   : > { %v752_v58 = vpop.eup %751  ;;  %698 = vmatpush3.bf16.msra.mxu0 %v303_v5 }
 0x418   : > { %v507_v59 = vpop.xlane.xlu1 %506  ;;  %v291_v60 = vsel %vm169_vm2, %v752_v58, 0.0  ;;  %709 = vmatprep.subr.bf16.mxu0 %v771_v0 }
 0x419   : > { %v508_v61 = vsub.f32 %v499_v47, %v507_v59  ;;  %292 = vadd.xlane.f32.xlu1 %v291_v60 }
 0x41b   : > { %v509_v62 = vmul.f32 1.442695, %v508_v61 }
 0x41c   : > { %v408_v6 = vpop.permute.xlu1 %407 }
 0x41d   : > { %755 = vpow2.f32 %v509_v62  ;;  %v413_v12 = vand.u32 %v408_v6, %v822_v18 }
 0x41f   : > { %v754_v63 = vpop.eup %753 }
 0x420   : > { %v401_v1 = vsel %vm169_vm2, %v754_v63, 0.0 }
 0x421   : > { %402 = vadd.xlane.f32.xlu1 %v401_v1 }
 0x427   : > { %v756_v2 = vpop.eup %755 }
 0x428   : > { %v511_v3 = vsel %vm169_vm2, %v756_v2, 0.0 }
 0x429   : > { %512 = vadd.xlane.f32.xlu1 %v511_v3 }
 0x43a   : > { %517 = vrot.lane.b32.xlu1 %v820_v15, %s775_s14 }
 0x4a6   : > { %v293_v7 = vpop.xlane.xlu1 %292 }
 0x4a7   : > { %757 = vrcp.f32 %v293_v7 }
 0x4ae   : > { %v403_v8 = vpop.xlane.xlu1 %402 }
 0x4af   : > { %759 = vrcp.f32 %v403_v8 }
 0x4b1   : > { %v758_v9 = vpop.eup %757 }
 0x4b2   : > { %v295_v10 = vmul.f32 %v758_v9, %v752_v58 }
 0x4b4   : > { %v296_v11 = vpack.c.bf16 %v295_v10, %v295_v10 }
 0x4b6   : > { %v513_v13 = vpop.xlane.xlu1 %512  ;;  %700 = vmatmul.mubr.msk.bf16.vlgmr.msra.gmra.mrb[4].mxu0 %vm184_vm5, %v296_v11 }
 0x4b7   : > { %761 = vrcp.f32 %v513_v13  ;;  %710 = vmatpush3.bf16.msra.mxu0 %v413_v12  ;;  %711 = vmatprep.mubr.msk.bf16.mxu0 %vm772_vm0, %v771_v0 }
 0x4b8   : > { %721 = vmatprep.subr.bf16.mxu0 %v771_v0 }
 0x4b9   : > { %v760_v14 = vpop.eup %759 }
 0x4ba   : > { %v405_v15 = vmul.f32 %v760_v14, %v754_v63  ;;  %v518_v16 = vpop.permute.xlu1 %517 }
 0x4bb   : > { %v523_v17 = vand.u32 %v518_v16, %v822_v18 }
 0x4bc   : > { %v406_v19 = vpack.c.bf16 %v405_v15, %v405_v15 }
 0x4be   : > { %712 = vmatmul.mubr.msk.bf16.vlgmr.msra.gmra.mrb[8].mxu0 %vm184_vm5, %v406_v19 }
 0x4bf   : > { %722 = vmatpush3.bf16.msra.mxu0 %v523_v17  ;;  %723 = vmatprep.mubr.msk.bf16.mxu0 %vm772_vm0, %v771_v0 }
 0x4c1   : > { %v762_v20 = vpop.eup %761 }
 0x4c2   : > { %v515_v21 = vmul.f32 %v762_v20, %v756_v2 }
 0x4c4   : > { %v516_v22 = vpack.c.bf16 %v515_v21, %v515_v21 }
 0x4c6   : > { %724 = vmatmul.mubr.msk.bf16.vlgmr.msra.gmra.mrb[12].mxu0 %vm184_vm5, %v516_v22 }
 0x589   : > { %v339_v23 = vpop.f32.mrb[4].mxu0 }
 0x58a   : > { %566 = vrot.lane.b32.xlu0 %v339_v23, %s780_s18  ;;  %v701_v24 = vpop.f32.mrb[5].mxu0 }
 0x58b   : > { %v342_v25 = vpop.f32.mrb[6].mxu0 }
 0x58c   : > { %v702_v26 = vpop.f32.mrb[7].mxu0 }
 0x591   : > { %v449_v18 = vpop.f32.mrb[8].mxu0 }
 0x592   : > { %570 = vrot.lane.b32.xlu1 %v449_v18, %s778_s16  ;;  %v713_v27 = vpop.f32.mrb[9].mxu0 }
 0x593   : > { %v452_v28 = vpop.f32.mrb[10].mxu0 }
 0x594   : > { %v714_v29 = vpop.f32.mrb[11].mxu0 }
 0x599   : > { %v559_v30 = vpop.f32.mrb[12].mxu0 }
 0x59a   : > { %574 = vrot.lane.b32.xlu0 %v559_v30, %s774_s13  ;;  %v725_v0 = vpop.f32.mrb[13].mxu0 }
 0x59b   : > { %v562_v31 = vpop.f32.mrb[14].mxu0 }
 0x59c   : > { %v726_v32 = vpop.f32.mrb[15].mxu0 }
 0x5fc   : > { %v567_v34 = vpop.permute.xlu0 %566 }
 0x5fd   : > { %v577_v36 = vsel %vm122_vm1, %v846_v33, %v567_v34 }
 0x604   : > { %v571_v35 = vpop.permute.xlu1 %570 }
 0x605   : > { %v579_v37 = vsel %vm578_vm6, %v577_v36, %v571_v35 }
 0x60c   : > { %v575_v38 = vpop.permute.xlu0 %574 }
 0x60d   : > { %v581_v40 = vsel %vm580_vm7, %v579_v37, %v575_v38 }
 0x60e   : > { %v582_v41 = vpack.c.bf16 %v581_v40, %v581_v40 }
 0x610   : > { %v587_v42 = vsel %vm585_vm10, %v582_v41, %v586_v39 }
 0x611   : > { %588 = vst [vmem:[%s114_s22] sm:$0x7] %v587_v42 }
 0x612 PF: > { %s11_s6 = sadd.s32 1, %s769_s6  }
 0x613   : > { %p8_p4 = scmp.ge.s32.totalorder %s11_s6, 4  }
 0x615   :  { %10 = sbr.rel (!%p8_p4) target bundleno = 1 (0x1), region = 54 }

// kernel: vit_forward.15
= control target key start
LH: loop header
LB: loop body
LE: loop exit
PB: predicated region body
PF: predicated region fallthrough
CT: control target
= control target key end

     0   :  { %v153_v0 = vmov 0.0   ;;  %vm154_vm0 = vmmov 0   ;;  %vm57_vm1 = vcmask 523264   ;;  %vm116_vm2 = vcmask 517120   ;;  %s212_s1 = inlined_call_operand.vmem [shape: bf16[64,64], index: 1, kind: input, shape index: {}]   ;;  %s213_s0 = inlined_call_operand.vmem [shape: bf16[10,64], index: 0, kind: input, shape index: {}]   ;;  %s214_s3 = inlined_call_operand.vmem [shape: f32[10,64], index: 3, kind: input, shape index: {}, may-alias: {3,4}]   ;;  %s215_s2 = inlined_call_operand.vmem [shape: f32[1,64], index: 2, kind: input, shape index: {}]   ;;  %s216_s4 = inlined_call_operand.vmem [shape: f32[10,64], index: 4, kind: output, shape index: {}, may-alias: {3,4}]  }
   0x1   :  { %134 = vmatprep.subr.bf16.mxu0 %v153_v0  ;;  %v148_v1 = vld [vmem:[%s212_s1] sm:$0xff]   ;;  %142 = vmatprep.mubr.msk.bf16.mxu0 %vm154_vm0, %v153_v0  ;;  %v149_v2 = vld [vmem:[%s212_s1 + $0x8] sm:$0xff]   ;;  %v150_v3 = vld [vmem:[%s212_s1 + $0x10] sm:$0xff]  }
   0x2   :  { %135 = vmatpush3.bf16.msra.mxu0 %v148_v1  ;;  %v151_v4 = vld [vmem:[%s212_s1 + $0x18] sm:$0xff]   ;;  %v152_v5 = vld [vmem:[%s213_s0] sm:$0x1f]   ;;  %v103_v9 = vld [vmem:[%s214_s3 + $0x8] sm:$0x3] }
   0x3   :  { %136 = vmatprep.subr.bf16.mxu0 %v153_v0  ;;  %v102_v6 = vld [vmem:[%s214_s3] sm:$0xff] }
   0x4   :  { %v128_v8 = vld [vmem:[%s215_s2] ss:$0 sm:$0xff] }
   0x6   :  { %137 = vmatpush3.bf16.msra.mxu0 %v149_v2 }
   0x7   :  { %138 = vmatprep.subr.bf16.mxu0 %v153_v0 }
   0xa   :  { %139 = vmatpush3.bf16.msra.mxu0 %v150_v3 }
   0xb   :  { %140 = vmatprep.subr.bf16.mxu0 %v153_v0 }
   0xe   :  { %141 = vmatpush3.bf16.msra.mxu0 %v151_v4 }
  0x11   :  { %143 = vmatmul.mubr.msk.bf16.vlgmr.msra.gmra.mrb[0].mxu0 %vm57_vm1, %v152_v5 }
  0xe4   :  { %v95_v7 = vpop.f32.mrb[0].mxu0 }
  0xe5   :  { %v104_v10 = vadd.f32 %v102_v6, %v95_v7  ;;  %v144_v11 = vpop.f32.mrb[1].mxu0 }
  0xe6   :  { %v98_v12 = vpop.f32.mrb[2].mxu0 }
  0xe7   :  { %v113_v13 = vadd.f32 %v128_v8, %v104_v10  ;;  %v105_v14 = vadd.f32 %v103_v9, %v98_v12  ;;  %v145_v15 = vpop.f32.mrb[3].mxu0 }
  0xe9   :  { %115 = vst.msk [vmem:[%s216_s4] sm:$0xff] %vm57_vm1, %v113_v13  ;;  %v114_v16 = vadd.f32 %v128_v8, %v105_v14 }
  0xeb   :  { %117 = vst.msk [vmem:[%s216_s4 + $0x8] sm:$0x3] %vm116_vm2, %v114_v16 }

// kernel: vit_forward.13
= control target key start
LH: loop header
LB: loop body
LE: loop exit
PB: predicated region body
PF: predicated region fallthrough
CT: control target
= control target key end

     0   :  { %vm23_vm0 = vcmask 523264   ;;  %vm27_vm1 = vcmask 517120   ;;  %v233_v22 = vmov 0   ;;  %v81_v40 = vlaneseq  ;;  %s312_s0 = inlined_call_operand.vmem [shape: f32[10,64], index: 0, kind: input, shape index: {}]   ;;  %s313_s3 = inlined_call_operand.vmem [shape: bf16[64,192], index: 3, kind: input, shape index: {}]   ;;  %s314_s1 = inlined_call_operand.vmem [shape: f32[1,64], index: 1, kind: input, shape index: {}]   ;;  %s315_s2 = inlined_call_operand.vmem [shape: f32[1,64], index: 2, kind: input, shape index: {}]   ;;  %s316_s4 = inlined_call_operand.vmem [shape: f32[1,192], index: 4, kind: input, shape index: {}]   ;;  %s317_s5 = inlined_call_operand.vmem [shape: bf16[10,192], index: 5, kind: output, shape index: {}]  }
   0x1   :  { %v21_v0 = vld [vmem:[%s312_s0] sm:$0xff]  ;;  %v22_v1 = vld [vmem:[%s312_s0 + $0x8] sm:$0x3]  ;;  %v220_v16 = vld [vmem:[%s313_s3 + $0x14] ss:$8 sps:$4 sm:$0xff]   ;;  %166 = vmatprep.mubr.bf16.mxu0 %v233_v22  ;;  %vm189_vm2 = vcmask 1043456  }
   0x2   :  { %v24_v2 = vsel %vm23_vm0, %v21_v0, 0.0  ;;  %v28_v3 = vsel %vm27_vm1, %v22_v1, 0.0  ;;  %v217_v14 = vld [vmem:[%s313_s3 + $0x4] ss:$8 sps:$4 sm:$0xff]   ;;  %v219_v15 = vld [vmem:[%s313_s3] ss:$8 sps:$4 sm:$0xff]  }
   0x3   :  { %25 = vadd.xlane.f32.xlu0 %v24_v2  ;;  %134 = vmatprep.subr.bf16.mxu0 %v217_v14  ;;  %v222_v17 = vld [vmem:[%s313_s3 + $0x10] ss:$8 sps:$4 sm:$0xff]   ;;  %v223_v18 = vld [vmem:[%s313_s3 + $0x24] ss:$8 sps:$4 sm:$0xff]   ;;  %v225_v19 = vld [vmem:[%s313_s3 + $0x20] ss:$8 sps:$4 sm:$0xff]  }
   0x4   :  { %135 = vmatpush1.bf16.msra.mxu0 %v219_v15  ;;  %v226_v20 = vld [vmem:[%s313_s3 + $0x34] ss:$8 sps:$4 sm:$0xff]   ;;  %v228_v21 = vld [vmem:[%s313_s3 + $0x30] ss:$8 sps:$4 sm:$0xff]   ;;  %v201_v31 = vld [vmem:[%s314_s1] ss:$0 sm:$0xff] }
   0x5   :  { %136 = vmatprep.subr.bf16.mxu0 %v220_v16  ;;  %v202_v35 = vld [vmem:[%s315_s2] ss:$0 sm:$0xff]  ;;  %v82_v41 = vshrl.u32 %v81_v40, 7  ;;  %vm190_vm3 = vcmask 523268   ;;  %vm193_vm4 = vcmask 1040384   ;;  %vm194_vm5 = vcmask 520196  }
   0x6   :  { %v79_v43 = vld [vmem:[%s316_s4] sm:$0x3]  ;;  %vm191_vm6 = vmor %vm190_vm3, %vm189_vm2 }
   0x7   :  { %29 = vadd.xlane.f32.xlu0 %v28_v3  ;;  %v83_v42 = vsub.s32 0, %v82_v41  ;;  %v87_v44 = vsub.s32 1, %v82_v41  ;;  %vm195_vm7 = vmor %vm194_vm5, %vm193_vm4 }
   0x8   :  { %137 = vmatpush1.bf16.msra.mxu0 %v222_v17 }
   0x9   :  { %138 = vmatprep.subr.bf16.mxu0 %v223_v18  ;;  %v84_v45 = vrot.slane %v79_v43, %v83_v42  ;;  %v88_v46 = vrot.slane %v79_v43, %v87_v44 }
   0xc   :  { %139 = vmatpush1.bf16.msra.mxu0 %v225_v19 }
   0xd   :  { %140 = vmatprep.subr.bf16.mxu0 %v226_v20 }
  0x10   :  { %141 = vmatpush1.bf16.msra.mxu0 %v228_v21 }
  0x90   :  { %v26_v4 = vpop.xlane.xlu0 %25 }
  0x91   :  { %v32_v5 = vmul.f32 0.015625, %v26_v4 }
  0x93   :  { %v34_v6 = vsub.f32 %v21_v0, %v32_v5 }
  0x94   :  { %v30_v7 = vpop.xlane.xlu0 %29 }
  0x95   :  { %v33_v8 = vmul.f32 0.015625, %v30_v7  ;;  %v36_v9 = vmul.f32 %v34_v6, %v34_v6 }
  0x97   :  { %v35_v10 = vsub.f32 %v22_v1, %v33_v8  ;;  %v38_v11 = vsel %vm23_vm0, %v36_v9, 0.0 }
  0x98   :  { %39 = vadd.xlane.f32.xlu1 %v38_v11 }
  0x99   :  { %v37_v12 = vmul.f32 %v35_v10, %v35_v10 }
  0x9b   :  { %v41_v13 = vsel %vm27_vm1, %v37_v12, 0.0 }
  0x9c   :  { %42 = vadd.xlane.f32.xlu1 %v41_v13 }
 0x125   :  { %v40_v23 = vpop.xlane.xlu1 %39 }
 0x126   :  { %v44_v24 = vmul.f32 0.015625, %v40_v23 }
 0x128   :  { %v46_v25 = vadd.f32 1e-06, %v44_v24 }
 0x129   :  { %v43_v26 = vpop.xlane.xlu1 %42 }
 0x12a   :  { %229 = vrsqrt.f32 %v46_v25  ;;  %v45_v27 = vmul.f32 0.015625, %v43_v26 }
 0x12c   :  { %v47_v28 = vadd.f32 1e-06, %v45_v27 }
 0x12e   :  { %231 = vrsqrt.f32 %v47_v28 }
 0x134   :  { %v230_v29 = vpop.eup %229 }
 0x135   :  { %v50_v30 = vmul.f32 %v230_v29, %v34_v6 }
 0x137   :  { %v59_v34 = vmul.f32 %v201_v31, %v50_v30 }
 0x138   :  { %v232_v32 = vpop.eup %231 }
 0x139   :  { %v51_v33 = vmul.f32 %v232_v32, %v35_v10  ;;  %v68_v37 = vadd.f32 %v202_v35, %v59_v34 }
 0x13b   :  { %v60_v36 = vmul.f32 %v201_v31, %v51_v33 }
 0x13d   :  { %v69_v38 = vadd.f32 %v202_v35, %v60_v36 }
 0x13f   :  { %v70_v39 = vpack.c.bf16 %v69_v38, %v68_v37 }
 0x141   :  { %211 = vmatmul.mubr.msk.bf16.vlgmr.msra.gmra.mrb[0].mxu0 %vm23_vm0, %v70_v39 }
 0x214   :  { %v168_v47 = vpop.f32.mrb[0].mxu0 }
 0x215   :  { %v169_v48 = vadd.f32 %v168_v47, %v84_v45  ;;  %v170_v49 = vpop.f32.mrb[1].mxu0 }
 0x216   :  { %v171_v50 = vadd.f32 %v170_v49, %v88_v46  ;;  %v172_v51 = vpop.f32.mrb[2].mxu0 }
 0x217   :  { %v173_v52 = vadd.f32 %v172_v51, %v84_v45  ;;  %v174_v53 = vpop.f32.mrb[3].mxu0 }
 0x218   :  { %v214_v54 = vpack.c.bf16 %v171_v50, %v169_v48  ;;  %v175_v55 = vadd.f32 %v174_v53, %v88_v46 }
 0x21a   :  { %192 = vst.msk [vmem:[%s317_s5] sm:$0xff] %vm191_vm6, %v214_v54  ;;  %v215_v56 = vpack.c.bf16 %v175_v55, %v173_v52 }
 0x21c   :  { %196 = vst.msk [vmem:[%s317_s5 + $0x8] sm:$0x11] %vm195_vm7, %v215_v56 }

// kernel: vit_forward.12
= control target key start
LH: loop header
LB: loop body
LE: loop exit
PB: predicated region body
PF: predicated region fallthrough
CT: control target
= control target key end

     0   :  { %vm538_vm0 = vcmask 523264   ;;  %s895_s1 = inlined_call_operand.vmem [shape: bf16[768,64], index: 1, kind: input, shape index: {}]   ;;  %s896_s0 = inlined_call_operand.vmem [shape: f32[8,768], index: 0, kind: input, shape index: {}]   ;;  %s897_s2 = inlined_call_operand.vmem [shape: f32[1,64], index: 2, kind: input, shape index: {}]   ;;  %s898_s3 = inlined_call_operand.vmem [shape: f32[8,64], index: 3, kind: output, shape index: {}]  }
   0x1   :  { %v659_v0 = vld [vmem:[%s895_s1 + $0x40] sm:$0xff]   ;;  %v663_v4 = vld [vmem:[%s895_s1 + $0x48] sm:$0xff]   ;;  %v667_v8 = vld [vmem:[%s895_s1 + $0x50] sm:$0xff]  }
   0x2   :  { %v660_v1 = vld [vmem:[%s895_s1] sm:$0xff]   ;;  %593 = vmatprep.subr.bf16.mxu0 %v659_v0  ;;  %v664_v5 = vld [vmem:[%s895_s1 + $0x8] sm:$0xff]   ;;  %v668_v9 = vld [vmem:[%s895_s1 + $0x10] sm:$0xff]  }
   0x3   :  { %v661_v2 = vld [vmem:[%s895_s1 + $0xc0] sm:$0xff]   ;;  %594 = vmatpush3.bf16.msra.mxu0 %v660_v1  ;;  %v665_v6 = vld [vmem:[%s895_s1 + $0xc8] sm:$0xff]   ;;  %v669_v10 = vld [vmem:[%s895_s1 + $0xd0] sm:$0xff]  }
   0x4   :  { %v662_v3 = vld [vmem:[%s895_s1 + $0x80] sm:$0xff]   ;;  %615 = vmatprep.subr.bf16.mxu1 %v661_v2  ;;  %595 = vmatprep.subr.bf16.mxu0 %v663_v4  ;;  %v666_v7 = vld [vmem:[%s895_s1 + $0x88] sm:$0xff]   ;;  %v670_v11 = vld [vmem:[%s895_s1 + $0x90] sm:$0xff]  }
   0x5   :  { %616 = vmatpush3.bf16.msra.mxu1 %v662_v3  ;;  %v671_v12 = vld [vmem:[%s895_s1 + $0x58] sm:$0xff]   ;;  %v675_v16 = vld [vmem:[%s895_s1 + $0x60] sm:$0xff]   ;;  %v679_v20 = vld [vmem:[%s895_s1 + $0x68] sm:$0xff]  }
   0x6   :  { %617 = vmatprep.subr.bf16.mxu1 %v665_v6  ;;  %v672_v13 = vld [vmem:[%s895_s1 + $0x18] sm:$0xff]   ;;  %v676_v17 = vld [vmem:[%s895_s1 + $0x20] sm:$0xff]   ;;  %v680_v21 = vld [vmem:[%s895_s1 + $0x28] sm:$0xff]  }
   0x7   :  { %596 = vmatpush3.bf16.msra.mxu0 %v664_v5  ;;  %v673_v14 = vld [vmem:[%s895_s1 + $0xd8] sm:$0xff]   ;;  %v677_v18 = vld [vmem:[%s895_s1 + $0xe0] sm:$0xff]   ;;  %v681_v22 = vld [vmem:[%s895_s1 + $0xe8] sm:$0xff]  }
   0x8   :  { %597 = vmatprep.subr.bf16.mxu0 %v667_v8  ;;  %v674_v15 = vld [vmem:[%s895_s1 + $0x98] sm:$0xff]   ;;  %v678_v19 = vld [vmem:[%s895_s1 + $0xa0] sm:$0xff]   ;;  %v682_v23 = vld [vmem:[%s895_s1 + $0xa8] sm:$0xff]  }
   0x9   :  { %618 = vmatpush3.bf16.msra.mxu1 %v666_v7  ;;  %v683_v24 = vld [vmem:[%s895_s1 + $0x70] sm:$0xff]   ;;  %v687_v28 = vld [vmem:[%s895_s1 + $0x78] sm:$0xff]   ;;  %v16_v31 = vld [vmem:[%s896_s0 + $0x8] sm:$0xff] }
   0xa   :  { %619 = vmatprep.subr.bf16.mxu1 %v669_v10  ;;  %v684_v25 = vld [vmem:[%s895_s1 + $0x30] sm:$0xff]   ;;  %v688_v29 = vld [vmem:[%s895_s1 + $0x38] sm:$0xff]   ;;  %v22_v32 = vpack.c.bf16 %v16_v31, %v16_v31  ;;  %v15_v34 = vld [vmem:[%s896_s0] sm:$0xff] }
   0xb   :  { %598 = vmatpush3.bf16.msra.mxu0 %v668_v9  ;;  %v685_v26 = vld [vmem:[%s895_s1 + $0xf0] sm:$0xff]   ;;  %v689_v30 = vld [vmem:[%s895_s1 + $0xf8] sm:$0xff]   ;;  %v21_v35 = vpack.c.bf16 %v15_v34, %v15_v34  ;;  %v691_v36 = vld [vmem:[%s895_s1 + $0x140] sm:$0xff]  }
   0xc   :  { %599 = vmatprep.subr.bf16.mxu0 %v671_v12  ;;  %v686_v27 = vld [vmem:[%s895_s1 + $0xb0] sm:$0xff]   ;;  %v690_v33 = vld [vmem:[%s895_s1 + $0xb8] sm:$0xff]   ;;  %450 = vmatprep.mubr.bf16.mxu0 %v22_v32  ;;  %v692_v39 = vld [vmem:[%s895_s1 + $0x100] sm:$0xff]  }
   0xd   :  { %620 = vmatpush3.bf16.msra.mxu1 %v670_v11  ;;  %v18_v37 = vld [vmem:[%s896_s0 + $0x18] sm:$0xff]  ;;  %v17_v40 = vld [vmem:[%s896_s0 + $0x10] sm:$0xff]  ;;  %v693_v42 = vld [vmem:[%s895_s1 + $0x148] sm:$0xff]  }
   0xe   :  { %621 = vmatprep.subr.bf16.mxu1 %v673_v14  ;;  %v24_v38 = vpack.c.bf16 %v18_v37, %v18_v37  ;;  %v23_v41 = vpack.c.bf16 %v17_v40, %v17_v40  ;;  %v694_v43 = vld [vmem:[%s895_s1 + $0x108] sm:$0xff]   ;;  %v695_v44 = vld [vmem:[%s895_s1 + $0x150] sm:$0xff]   ;;  %v697_v46 = vld [vmem:[%s895_s1 + $0x158] sm:$0xff]  }
   0xf   :  { %600 = vmatpush3.bf16.msra.mxu0 %v672_v13  ;;  %v696_v45 = vld [vmem:[%s895_s1 + $0x110] sm:$0xff]   ;;  %v698_v47 = vld [vmem:[%s895_s1 + $0x118] sm:$0xff]   ;;  %v699_v48 = vld [vmem:[%s895_s1 + $0x160] sm:$0xff]  }
  0x10   :  { %601 = vmatprep.subr.bf16.mxu0 %v675_v16  ;;  %490 = vmatprep.mubr.bf16.mxu1 %v24_v38  ;;  %v700_v49 = vld [vmem:[%s895_s1 + $0x120] sm:$0xff]   ;;  %v701_v50 = vld [vmem:[%s895_s1 + $0x168] sm:$0xff]   ;;  %v703_v54 = vld [vmem:[%s895_s1 + $0x170] sm:$0xff]  }
  0x11   :  { %622 = vmatpush3.bf16.msra.mxu1 %v674_v15  ;;  %v20_v51 = vld [vmem:[%s896_s0 + $0x28] sm:$0xff]  ;;  %v704_v55 = vld [vmem:[%s895_s1 + $0x130] sm:$0xff]   ;;  %v705_v56 = vld [vmem:[%s895_s1 + $0x178] sm:$0xff]  }
  0x12   :  { %623 = vmatprep.subr.bf16.mxu1 %v677_v18  ;;  %v26_v52 = vpack.c.bf16 %v20_v51, %v20_v51  ;;  %v702_v53 = vld [vmem:[%s895_s1 + $0x128] sm:$0xff]   ;;  %v706_v57 = vld [vmem:[%s895_s1 + $0x138] sm:$0xff]   ;;  %v19_v58 = vld [vmem:[%s896_s0 + $0x20] sm:$0xff] }
  0x13   :  { %602 = vmatpush3.bf16.msra.mxu0 %v676_v17  ;;  %v25_v59 = vpack.c.bf16 %v19_v58, %v19_v58  ;;  %v544_v61 = vld [vmem:[%s897_s2] ss:$0 sm:$0xff] }
  0x14   :  { %603 = vmatprep.subr.bf16.mxu0 %v679_v20 }
  0x15   :  { %624 = vmatpush3.bf16.msra.mxu1 %v678_v19 }
  0x16   :  { %625 = vmatprep.subr.bf16.mxu1 %v681_v22 }
  0x17   :  { %604 = vmatpush3.bf16.msra.mxu0 %v680_v21 }
  0x18   :  { %605 = vmatprep.subr.bf16.mxu0 %v683_v24 }
  0x19   :  { %626 = vmatpush3.bf16.msra.mxu1 %v682_v23 }
  0x1a   :  { %627 = vmatprep.subr.bf16.mxu1 %v685_v26 }
  0x1b   :  { %606 = vmatpush3.bf16.msra.mxu0 %v684_v25 }
  0x1c   :  { %607 = vmatprep.subr.bf16.mxu0 %v687_v28 }
  0x1d   :  { %628 = vmatpush3.bf16.msra.mxu1 %v686_v27 }
  0x1e   :  { %629 = vmatprep.subr.bf16.mxu1 %v689_v30 }
  0x1f   :  { %608 = vmatpush3.bf16.msra.mxu0 %v688_v29 }
  0x20   :  { %637 = vmatprep.subr.bf16.mxu0 %v691_v36 }
  0x21   :  { %630 = vmatpush3.bf16.msra.mxu1 %v690_v33 }
  0x22   :  { %451 = vmatmul.mubr.bf16.vlgmr.msra.gmra.mrb[0].mxu0 %v21_v35 }
  0x23   :  { %638 = vmatpush3.bf16.msra.mxu0 %v692_v39  ;;  %530 = vmatprep.mubr.bf16.mxu0 %v26_v52 }
  0x24   :  { %491 = vmatmul.mubr.bf16.vlgmr.msra.gmra.mrb[0].mxu1 %v23_v41  ;;  %639 = vmatprep.subr.bf16.mxu0 %v693_v42 }
  0x27   :  { %640 = vmatpush3.bf16.msra.mxu0 %v694_v43 }
  0x28   :  { %641 = vmatprep.subr.bf16.mxu0 %v695_v44 }
  0x2b   :  { %642 = vmatpush3.bf16.msra.mxu0 %v696_v45 }
  0x2c   :  { %643 = vmatprep.subr.bf16.mxu0 %v697_v46 }
  0x2f   :  { %644 = vmatpush3.bf16.msra.mxu0 %v698_v47 }
  0x30   :  { %645 = vmatprep.subr.bf16.mxu0 %v699_v48 }
  0x33   :  { %646 = vmatpush3.bf16.msra.mxu0 %v700_v49 }
  0x34   :  { %647 = vmatprep.subr.bf16.mxu0 %v701_v50 }
  0x37   :  { %648 = vmatpush3.bf16.msra.mxu0 %v702_v53 }
  0x38   :  { %649 = vmatprep.subr.bf16.mxu0 %v703_v54 }
  0x3b   :  { %650 = vmatpush3.bf16.msra.mxu0 %v704_v55 }
  0x3c   :  { %651 = vmatprep.subr.bf16.mxu0 %v705_v56 }
  0x3f   :  { %652 = vmatpush3.bf16.msra.mxu0 %v706_v57 }
  0x42   :  { %531 = vmatmul.mubr.bf16.vlgmr.msra.gmra.mrb[4].mxu0 %v25_v59 }
  0xf5   :  { %v609_v60 = vpop.f32.mrb[0].mxu0 }
  0xf6   :  { %v610_v62 = vpop.f32.mrb[1].mxu0 }
  0xf7   :  { %v611_v63 = vadd.f32 %v610_v62, %v609_v60  ;;  %v612_v0 = vpop.f32.mrb[2].mxu0  ;;  %v631_v1 = vpop.f32.mrb[0].mxu1 }
  0xf8   :  { %v613_v2 = vpop.f32.mrb[3].mxu0  ;;  %v632_v4 = vpop.f32.mrb[1].mxu1 }
  0xf9   :  { %v453_v3 = vadd.f32 %v611_v63, %v544_v61  ;;  %v633_v5 = vadd.f32 %v632_v4, %v631_v1  ;;  %v634_v6 = vpop.f32.mrb[2].mxu1 }
  0xfa   :  { %v635_v7 = vpop.f32.mrb[3].mxu1 }
  0xfb   :  { %v493_v8 = vadd.f32 %v633_v5, %v453_v3 }
 0x115   :  { %v653_v9 = vpop.f32.mrb[4].mxu0 }
 0x116   :  { %v654_v10 = vpop.f32.mrb[5].mxu0 }
 0x117   :  { %v655_v11 = vadd.f32 %v654_v10, %v653_v9  ;;  %v656_v12 = vpop.f32.mrb[6].mxu0 }
 0x118   :  { %v657_v13 = vpop.f32.mrb[7].mxu0 }
 0x119   :  { %v533_v14 = vadd.f32 %v655_v11, %v493_v8 }
 0x11b   :  { %539 = vst.msk [vmem:[%s898_s3] sm:$0xff] %vm538_vm0, %v533_v14 }

// kernel: vit_forward.17
= control target key start
LH: loop header
LB: loop body
LE: loop exit
PB: predicated region body
PF: predicated region fallthrough
CT: control target
= control target key end

     0   :  { %vm212_vm0 = vcmask 523264   ;;  %vm214_vm1 = vcmask 517120   ;;  %s374_s1 = inlined_call_operand.vmem [shape: bf16[256,64], index: 1, kind: input, shape index: {}]   ;;  %s375_s0 = inlined_call_operand.vmem [shape: bf16[10,256], index: 0, kind: input, shape index: {}]   ;;  %s376_s3 = inlined_call_operand.vmem [shape: f32[10,64], index: 3, kind: input, shape index: {}, may-alias: {3,4}]   ;;  %s377_s2 = inlined_call_operand.vmem [shape: f32[1,64], index: 2, kind: input, shape index: {}]   ;;  %s378_s4 = inlined_call_operand.vmem [shape: f32[10,64], index: 4, kind: output, shape index: {}, may-alias: {3,4}]  }
   0x1   :  { %v261_v0 = vld [vmem:[%s374_s1 + $0x40] sm:$0xff]   ;;  %v263_v2 = vld [vmem:[%s374_s1 + $0x48] sm:$0xff]   ;;  %v265_v4 = vld [vmem:[%s374_s1 + $0x50] sm:$0xff]  }
   0x2   :  { %v262_v1 = vld [vmem:[%s374_s1] sm:$0xff]   ;;  %239 = vmatprep.subr.bf16.mxu0 %v261_v0  ;;  %v264_v3 = vld [vmem:[%s374_s1 + $0x8] sm:$0xff]   ;;  %v266_v5 = vld [vmem:[%s374_s1 + $0x10] sm:$0xff]  }
   0x3   :  { %240 = vmatpush3.bf16.msra.mxu0 %v262_v1  ;;  %v267_v6 = vld [vmem:[%s374_s1 + $0x58] sm:$0xff]   ;;  %v269_v8 = vld [vmem:[%s374_s1 + $0x60] sm:$0xff]   ;;  %v271_v10 = vld [vmem:[%s374_s1 + $0x68] sm:$0xff]  }
   0x4   :  { %241 = vmatprep.subr.bf16.mxu0 %v263_v2  ;;  %v268_v7 = vld [vmem:[%s374_s1 + $0x18] sm:$0xff]   ;;  %v270_v9 = vld [vmem:[%s374_s1 + $0x20] sm:$0xff]   ;;  %v272_v12 = vld [vmem:[%s374_s1 + $0x28] sm:$0xff]  }
   0x5   :  { %v279_v11 = vld [vmem:[%s375_s0 + $0x4] ss:$8 sps:$4 sm:$0x1f]   ;;  %v273_v13 = vld [vmem:[%s374_s1 + $0x70] sm:$0xff]   ;;  %v275_v15 = vld [vmem:[%s374_s1 + $0x78] sm:$0xff]  }
   0x6   :  { %190 = vmatprep.mubr.bf16.mxu0 %v279_v11  ;;  %v274_v14 = vld [vmem:[%s374_s1 + $0x30] sm:$0xff]   ;;  %v276_v16 = vld [vmem:[%s374_s1 + $0x38] sm:$0xff]   ;;  %v277_v17 = vld [vmem:[%s375_s0] ss:$8 sps:$4 sm:$0x1f]  }
   0x7   :  { %242 = vmatpush3.bf16.msra.mxu0 %v264_v3  ;;  %v199_v20 = vld [vmem:[%s376_s3] sm:$0xff]  ;;  %v200_v25 = vld [vmem:[%s376_s3 + $0x8] sm:$0x3] }
   0x8   :  { %243 = vmatprep.subr.bf16.mxu0 %v265_v4  ;;  %v238_v23 = vld [vmem:[%s377_s2] ss:$0 sm:$0xff] }
   0xb   :  { %244 = vmatpush3.bf16.msra.mxu0 %v266_v5 }
   0xc   :  { %245 = vmatprep.subr.bf16.mxu0 %v267_v6 }
   0xf   :  { %246 = vmatpush3.bf16.msra.mxu0 %v268_v7 }
  0x10   :  { %247 = vmatprep.subr.bf16.mxu0 %v269_v8 }
  0x13   :  { %248 = vmatpush3.bf16.msra.mxu0 %v270_v9 }
  0x14   :  { %249 = vmatprep.subr.bf16.mxu0 %v271_v10 }
  0x17   :  { %250 = vmatpush3.bf16.msra.mxu0 %v272_v12 }
  0x18   :  { %251 = vmatprep.subr.bf16.mxu0 %v273_v13 }
  0x1b   :  { %252 = vmatpush3.bf16.msra.mxu0 %v274_v14 }
  0x1c   :  { %253 = vmatprep.subr.bf16.mxu0 %v275_v15 }
  0x1f   :  { %254 = vmatpush3.bf16.msra.mxu0 %v276_v16 }
  0x22   :  { %191 = vmatmul.mubr.bf16.vlgmr.msra.gmra.mrb[0].mxu0 %v277_v17 }
  0xf5   :  { %v255_v18 = vpop.f32.mrb[0].mxu0 }
  0xf6   :  { %v256_v19 = vpop.f32.mrb[1].mxu0 }
  0xf7   :  { %v257_v21 = vadd.f32 %v256_v19, %v255_v18  ;;  %v258_v22 = vpop.f32.mrb[2].mxu0 }
  0xf8   :  { %v259_v24 = vpop.f32.mrb[3].mxu0 }
  0xf9   :  { %v201_v26 = vadd.f32 %v257_v21, %v199_v20  ;;  %v260_v27 = vadd.f32 %v259_v24, %v258_v22 }
  0xfb   :  { %v210_v28 = vadd.f32 %v238_v23, %v201_v26  ;;  %v202_v29 = vadd.f32 %v260_v27, %v200_v25 }
  0xfd   :  { %213 = vst.msk [vmem:[%s378_s4] sm:$0xff] %vm212_vm0, %v210_v28  ;;  %v211_v30 = vadd.f32 %v238_v23, %v202_v29 }
  0xff   :  { %215 = vst.msk [vmem:[%s378_s4 + $0x8] sm:$0x3] %vm214_vm1, %v211_v30 }

// kernel: vit_forward.16
= control target key start
LH: loop header
LB: loop body
LE: loop exit
PB: predicated region body
PF: predicated region fallthrough
CT: control target
= control target key end

     0   :  { %s816_s18 = smov 0   ;;  %s818_s19 = smov 0   ;;  %s912_s0 = inlined_call_operand.vmem [shape: f32[10,64], index: 0, kind: input, shape index: {}]   ;;  %s913_s1 = inlined_call_operand.vmem [shape: f32[1,64], index: 1, kind: input, shape index: {}]   ;;  %s914_s2 = inlined_call_operand.vmem [shape: f32[1,64], index: 2, kind: input, shape index: {}]   ;;  %s915_s3 = inlined_call_operand.vmem [shape: bf16[64,256], index: 3, kind: input, shape index: {}]   ;;  %s916_s4 = inlined_call_operand.vmem [shape: f32[1,256], index: 4, kind: input, shape index: {}]   ;;  %s917_s5 = inlined_call_operand.vmem [shape: bf16[10,256], index: 5, kind: output, shape index: {}]  }
   0x1   :  { %s820_s20 = smov 0   ;;  %s822_s21 = smov 0  }
   0x2   :  { %s824_s22 = smov 0  }
   0x3 LB: > { %s24_s23 = sadd.s32 1, %s778_s21  ;;  %s647_s24 = sadd.s32 4294967295, %s782_s22   ;;  %s782_s22 = sphi %s824_s22, %s15_s22   ;;  %s778_s21 = sphi %s822_s21, %s922_s21   ;;  %s774_s20 = sphi %s820_s20, %s921_s20   ;;  %s770_s19 = sphi %s818_s19, %s920_s19   ;;  %s766_s18 = sphi %s816_s18, %s919_s18  }
   0x4   : > { %p25_p0 = scmp.ge.s32.totalorder %s24_s23, 2  ;;  %p109_p1 = scmp.ne.s32.totalorder %s770_s19, %s766_s18 }
   0x5   : > { %p110_p2 = scmp.eq.s32.totalorder %s782_s22, 0  ;;  %p167_p4 = scmp.eq.s32.totalorder %s647_s24, 1 }
   0x6   : > { %s924_s23 = smov (%p25_p0, %s24_s23), 0  ;;  %s102_s26 = sadd.s32 1, %s770_s19 }
   0x7   : > { %p111_p3 = por %p110_p2, %p109_p1  ;;  %s99_s25 = ssub.s32 %s778_s21, %s924_s23 }
   0x8   : > { %p100_p5 = scmp.eq.s32.totalorder %s99_s25, 0  ;;  %p851_p6 = por %p167_p4, %p109_p1 }
   0x9   : > { %p651_p7 = scmp.ge.s32.totalorder %s782_s22, 2 }
   0xa   : > { %s856_s28 = scalar_select %p100_p5, %s770_s19, %s102_s26  }
   0xb   : > { %204 = sbr.rel (%p651_p7) target bundleno = 27 (0x1b), region = 28 }
  0x12   : > { %207 = sbr.rel (!%p111_p3) target bundleno = 27 (0x1b), region = 32  ;;  %s209_s29 = sand.u32 (%p111_p3), 1, %s770_s19  }
  0x13   : > { %s653_s30 = sshll.u32 (%p111_p3), %s778_s21, 2  ;;  %s652_s6 = sshll.u32 (%p111_p3), %s209_s29, 5 }
  0x14   : > { %s213_s9 = scalar_lea.vmem (%p111_p3), %s915_s3, %s653_s30  ;;  %s211_s10 = scalar_lea.vmem (%p111_p3), [#allocation3], %s652_s6 }
  0x15   : > { %v229_v0 = vld [vmem:[%s213_s9] sm:$0xf] (%p111_p3)  ;;  %v231_v1 = vld [vmem:[%s213_s9 + $0x8] sm:$0xf] (%p111_p3)  ;;  %v233_v2 = vld [vmem:[%s213_s9 + $0x10] sm:$0xf] (%p111_p3) }
  0x16   : > { %230 = vst [vmem:[%s211_s10] sm:$0xf] (%p111_p3), %v229_v0  ;;  %232 = vst [vmem:[%s211_s10 + $0x4] sm:$0xf] (%p111_p3), %v231_v1  ;;  %v235_v3 = vld [vmem:[%s213_s9 + $0x18] sm:$0xf] (%p111_p3) }
  0x17   : > { %v237_v4 = vld [vmem:[%s213_s9 + $0x20] sm:$0xf] (%p111_p3)  ;;  %234 = vst [vmem:[%s211_s10 + $0x8] sm:$0xf] (%p111_p3), %v233_v2  ;;  %236 = vst [vmem:[%s211_s10 + $0xc] sm:$0xf] (%p111_p3), %v235_v3 }
  0x18   : > { %238 = vst [vmem:[%s211_s10 + $0x10] sm:$0xf] (%p111_p3), %v237_v4  ;;  %v239_v5 = vld [vmem:[%s213_s9 + $0x28] sm:$0xf] (%p111_p3)  ;;  %v241_v6 = vld [vmem:[%s213_s9 + $0x30] sm:$0xf] (%p111_p3) }
  0x19   : > { %v243_v7 = vld [vmem:[%s213_s9 + $0x38] sm:$0xf]  ;;  %240 = vst [vmem:[%s211_s10 + $0x14] sm:$0xf] %v239_v5  ;;  %242 = vst [vmem:[%s211_s10 + $0x18] sm:$0xf] %v241_v6 }
  0x1a   : > { %244 = vst [vmem:[%s211_s10 + $0x1c] sm:$0xf] %v243_v7 }
  0x1b PF: > { %p654_p8 = scmp.ge.s32.totalorder %s782_s22, 1  ;;  %p288_p9 = scmp.lt.s32.totalorder %s782_s22, 3 }
  0x1d   : > { %p289_p10 = pnand %p654_p8, %p288_p9 }
  0x1e   : > { %v340_v8 = vld [vmem:[%s912_s0] sm:$0xff] (!%p289_p10)  ;;  %vm342_vm0 = vcmask (!%p289_p10), 523264   ;;  %v341_v9 = vld [vmem:[%s912_s0 + $0x8] sm:$0x3] (!%p289_p10)  ;;  %vm346_vm1 = vcmask (!%p289_p10), 517120   ;;  %s295_s15 = sand.u32 (!%p289_p10), 1, %s766_s18  }
  0x1f   : > { %292 = sbr.rel (%p289_p10) target bundleno = 602 (0x25a), region = 77  ;;  %v343_v10 = vsel (!%p289_p10), %vm342_vm0, %v340_v8, 0.0  ;;  %v347_v11 = vsel (!%p289_p10), %vm346_vm1, %v341_v9, 0.0  ;;  %s655_s16 = sshll.u32 (!%p289_p10), %s295_s15, 5  ;;  %v784_v23 = vmov (!%p289_p10), 0.0   ;;  %vm785_vm2 = vmmov (!%p289_p10), 0  }
  0x20   : > { %344 = vadd.xlane.f32.xlu0 (!%p289_p10), %v343_v10  ;;  %s297_s17 = scalar_lea.vmem (!%p289_p10), [#allocation3], %s655_s16  ;;  %678 = vmatprep.subr.bf16.mxu0 (!%p289_p10), %v784_v23  ;;  %v657_v35 = vld [vmem:[%s913_s1] ss:$0 sm:$0xff] (!%p289_p10)  ;;  %p335_p11 = scmp.lt.s32.totalorder (!%p289_p10), %s774_s20, 1 }
  0x21   : > { %v732_v22 = vld [vmem:[%s297_s17] sm:$0xff] (!%p289_p10)   ;;  %v733_v24 = vld [vmem:[%s297_s17 + $0x8] sm:$0xff] (!%p289_p10)   ;;  %v734_v25 = vld [vmem:[%s297_s17 + $0x10] sm:$0xff] (!%p289_p10)   ;;  %686 = vmatprep.mubr.msk.bf16.mxu0 (!%p289_p10), %vm785_vm2, %v784_v23  ;;  %s656_s9 = sshll.u32 (!%p289_p10), %s295_s15, 3 }
  0x22   : > { %679 = vmatpush3.bf16.msra.mxu0 (!%p289_p10), %v732_v22  ;;  %v735_v26 = vld [vmem:[%s297_s17 + $0x18] sm:$0xff] (!%p289_p10)   ;;  %v658_v39 = vld [vmem:[%s914_s2] ss:$0 sm:$0xff] (!%p289_p10)  ;;  %s328_s10 = scalar_lea.vmem (!%p289_p10), [#allocation4], %s656_s9 }
  0x23   : > { %680 = vmatprep.subr.bf16.mxu0 (!%p289_p10), %v784_v23 }
  0x24   : > { %348 = vadd.xlane.f32.xlu0 (!%p289_p10), %v347_v11 }
  0x26   : > { %681 = vmatpush3.bf16.msra.mxu0 %v733_v24  ;;  %s336_s30 = scalar_select %p335_p11, %s774_s20, 1 }
  0x27   : > { %682 = vmatprep.subr.bf16.mxu0 %v784_v23  ;;  %s668_s11 = sshll.u32 (%p851_p6), %s774_s20, 2 }
  0x28   : > { %s337_s8 = scalar_lea.vmem %s916_s4, %s336_s30  ;;  %s512_s13 = scalar_lea.vmem (%p851_p6), %s917_s5, %s668_s11 }
  0x29   : > { %v659_v44 = vld [vmem:[%s337_s8] ss:$0 sm:$0xff] }
  0x2a   : > { %683 = vmatpush3.bf16.msra.mxu0 %v734_v25 }
  0x2b   : > { %684 = vmatprep.subr.bf16.mxu0 %v784_v23 }
  0x2e   : > { %685 = vmatpush3.bf16.msra.mxu0 %v735_v26 }
  0xad   : > { %v345_v12 = vpop.xlane.xlu0 %344 }
  0xae   : > { %v351_v13 = vmul.f32 0.015625, %v345_v12 }
  0xb0   : > { %v353_v14 = vsub.f32 %v340_v8, %v351_v13 }
  0xb1   : > { %v349_v15 = vpop.xlane.xlu0 %348 }
  0xb2   : > { %v352_v16 = vmul.f32 0.015625, %v349_v15  ;;  %v355_v17 = vmul.f32 %v353_v14, %v353_v14 }
  0xb4   : > { %v354_v18 = vsub.f32 %v341_v9, %v352_v16  ;;  %v357_v19 = vsel %vm342_vm0, %v355_v17, 0.0 }
  0xb5   : > { %358 = vadd.xlane.f32.xlu1 %v357_v19 }
  0xb6   : > { %v356_v20 = vmul.f32 %v354_v18, %v354_v18 }
  0xb8   : > { %v360_v21 = vsel %vm346_vm1, %v356_v20, 0.0 }
  0xb9   : > { %361 = vadd.xlane.f32.xlu1 %v360_v21 }
 0x142   : > { %v359_v27 = vpop.xlane.xlu1 %358 }
 0x143   : > { %v363_v28 = vmul.f32 0.015625, %v359_v27 }
 0x145   : > { %v365_v29 = vadd.f32 1e-06, %v363_v28 }
 0x146   : > { %v362_v30 = vpop.xlane.xlu1 %361 }
 0x147   : > { %736 = vrsqrt.f32 %v365_v29  ;;  %v364_v31 = vmul.f32 0.015625, %v362_v30 }
 0x149   : > { %v366_v32 = vadd.f32 1e-06, %v364_v31 }
 0x14b   : > { %738 = vrsqrt.f32 %v366_v32 }
 0x151   : > { %v737_v33 = vpop.eup %736 }
 0x152   : > { %v369_v34 = vmul.f32 %v737_v33, %v353_v14 }
 0x154   : > { %v378_v38 = vmul.f32 %v657_v35, %v369_v34 }
 0x155   : > { %v739_v36 = vpop.eup %738 }
 0x156   : > { %v370_v37 = vmul.f32 %v739_v36, %v354_v18  ;;  %v387_v41 = vadd.f32 %v658_v39, %v378_v38 }
 0x158   : > { %v379_v40 = vmul.f32 %v657_v35, %v370_v37 }
 0x15a   : > { %v388_v42 = vadd.f32 %v658_v39, %v379_v40 }
 0x15c   : > { %v389_v43 = vpack.c.bf16 %v388_v42, %v387_v41 }
 0x15e   : > { %687 = vmatmul.mubr.msk.bf16.vlgmr.msra.gmra.mrb[0].mxu0 %vm342_vm0, %v389_v43 }
 0x231   : > { %v466_v45 = vpop.f32.mrb[0].mxu0 }
 0x232   : > { %v467_v46 = vadd.f32 %v659_v44, %v466_v45  ;;  %v688_v47 = vpop.f32.mrb[1].mxu0 }
 0x233   : > { %v469_v48 = vpop.f32.mrb[2].mxu0 }
 0x234   : > { %v475_v49 = vmul.f32 0.044715, %v467_v46  ;;  %v470_v50 = vadd.f32 %v659_v44, %v469_v48  ;;  %v689_v51 = vpop.f32.mrb[3].mxu0  ;;  %v473_v62 = vmul.f32 0.5, %v467_v46 }
 0x236   : > { %v477_v52 = vmul.f32 %v475_v49, %v467_v46  ;;  %v476_v53 = vmul.f32 0.044715, %v470_v50  ;;  %v474_v2 = vmul.f32 0.5, %v470_v50 }
 0x238   : > { %v479_v54 = vmul.f32 %v477_v52, %v467_v46  ;;  %v478_v55 = vmul.f32 %v476_v53, %v470_v50 }
 0x23a   : > { %v481_v56 = vadd.f32 %v479_v54, %v467_v46  ;;  %v480_v57 = vmul.f32 %v478_v55, %v470_v50 }
 0x23c   : > { %v483_v58 = vmul.f32 0.7978846, %v481_v56  ;;  %v482_v59 = vadd.f32 %v480_v57, %v470_v50 }
 0x23e   : > { %740 = vtanh.f32 %v483_v58  ;;  %v484_v60 = vmul.f32 0.7978846, %v482_v59 }
 0x240   : > { %742 = vtanh.f32 %v484_v60 }
 0x248   : > { %v741_v61 = vpop.eup %740 }
 0x249   : > { %v487_v63 = vadd.f32 1.0, %v741_v61 }
 0x24a   : > { %v743_v0 = vpop.eup %742 }
 0x24b   : > { %v489_v1 = vmul.f32 %v487_v63, %v473_v62  ;;  %v488_v3 = vadd.f32 1.0, %v743_v0  ;;  %507 = sbr.rel (!%p851_p6) target bundleno = 602 (0x25a), region = 85 }
 0x24d   : > { %v671_v4 = vpack.c.bf16 %v489_v1, %v489_v1  ;;  %v490_v5 = vmul.f32 %v488_v3, %v474_v2 }
 0x24f   : > { %499 = vst [vmem:[%s328_s10] sm:$0xf] %v671_v4  ;;  %v672_v6 = vpack.c.bf16 %v490_v5, %v490_v5 }
 0x251   : > { %500 = vst [vmem:[%s328_s10 + $0x4] sm:$0x1] %v672_v6 }
 0x256   : > { %v528_v7 = vld [vmem:[%s328_s10] sm:$0xf] }
 0x257   : > { %529 = vst [vmem:[%s512_s13] sm:$0xf] %v528_v7 }
 0x258   : > { %v530_v8 = vld [vmem:[%s328_s10 + $0x4] sm:$0xf] }
 0x259   : > { %531 = vst [vmem:[%s512_s13 + $0x8] sm:$0xf] %v530_v8 }
 0x25a PF: > { %s15_s22 = sadd.s32 1, %s782_s22   ;;  %s919_s18 = smov %s770_s19 }
 0x25b   : > { %p12_p12 = scmp.ge.s32.totalorder %s15_s22, 4   ;;  %s920_s19 = smov %s856_s28 }
 0x25c   : > { %s921_s20 = smov %s778_s21  ;;  %s922_s21 = smov %s924_s23 }
 0x25d   :  { %14 = sbr.rel (!%p12_p12) target bundleno = 3 (0x3), region = 163 }

// kernel: vit_forward.23
= control target key start
LH: loop header
LB: loop body
LE: loop exit
PB: predicated region body
PF: predicated region fallthrough
CT: control target
= control target key end

     0   :  { %vm23_vm0 = vcmask 517120   ;;  %s281_s0 = inlined_call_operand.vmem [shape: f32[2,64], index: 0, kind: input, shape index: {}]   ;;  %s282_s1 = inlined_call_operand.vmem [shape: f32[1,64], index: 1, kind: input, shape index: {}]   ;;  %s283_s2 = inlined_call_operand.vmem [shape: f32[1,64], index: 2, kind: input, shape index: {}]   ;;  %s284_s3 = inlined_call_operand.vmem [shape: bf16[64,16], index: 3, kind: input, shape index: {}]   ;;  %s285_s4 = inlined_call_operand.vmem [shape: f32[1,16], index: 4, kind: input, shape index: {}]   ;;  %s286_s5 = inlined_call_operand.hbm [shape: f32[2,16], index: 5, kind: output, shape index: {}]  }
   0x1   :  { %v22_v0 = vld [vmem:[%s281_s0] sm:$0x3] }
   0x2   :  { %v24_v1 = vsel %vm23_vm0, %v22_v0, 0.0 }
   0x3   :  { %25 = vadd.xlane.f32.xlu0 %v24_v1 }
   0x4   :  { %10 = vsyncpa [#allocation4], 0  ;;  %v182_v7 = vld [vmem:[%s284_s3] sm:$0xff]   ;;  %v212_v8 = vmov 0.0   ;;  %v183_v9 = vld [vmem:[%s284_s3 + $0x8] sm:$0xff]   ;;  %vm213_vm1 = vmmov 0  }
   0x5   :  { %167 = vmatprep.subr.bf16.mxu0 %v212_v8  ;;  %v184_v10 = vld [vmem:[%s284_s3 + $0x10] sm:$0xff]   ;;  %v185_v11 = vld [vmem:[%s284_s3 + $0x18] sm:$0xff]   ;;  %175 = vmatprep.mubr.msk.bf16.mxu0 %vm213_vm1, %v212_v8  ;;  %v154_v16 = vld [vmem:[%s282_s1] ss:$0 sm:$0xff]  ;;  %vm94_vm2 = vcmask 523264   ;;  %s214_s7 = smov [#allocation3]  }
   0x6   :  { %168 = vmatpush3.bf16.msra.mxu0 %v182_v7  ;;  %v155_v18 = vld [vmem:[%s283_s2] ss:$0 sm:$0xff]  ;;  %s146_s8 = sshll.u32 %s214_s7, 4  ;;  %vm138_vm3 = vcmask 123904   ;;  %s147_s8 = int_to_ptr.vmem [resolvable:$true] %s146_s8 }
   0x7   :  { %169 = vmatprep.subr.bf16.mxu0 %v212_v8  ;;  %v156_v22 = vld [vmem:[%s285_s4] ss:$0 sm:$0xff]  ;;  %s188_s1 = scalar_lea.vmem %s147_s8, 32  ;;  %p193_p1 = scmp.lt.s32.totalorder %s147_s8, %s147_s8 }
   0x8   :  { %p189_p0 = scmp.ne.s32.totalorder %s147_s8, %s188_s1  ;;  %p194_p2 = scmp.lt.s32.totalorder %s188_s1, %s188_s1 }
   0xa   :  { %170 = vmatpush3.bf16.msra.mxu0 %v183_v9  ;;  %p195_p3 = por %p194_p2, %p193_p1 }
   0xb   :  { %171 = vmatprep.subr.bf16.mxu0 %v212_v8 }
   0xc   :  { %p196_p4 = pnand %p195_p3, %p189_p0 }
   0xe   :  { %172 = vmatpush3.bf16.msra.mxu0 %v184_v10 }
   0xf   :  { %173 = vmatprep.subr.bf16.mxu0 %v212_v8 }
  0x12   :  { %174 = vmatpush3.bf16.msra.mxu0 %v185_v11 }
  0x90   :  { %v26_v2 = vpop.xlane.xlu0 %25 }
  0x91   :  { %v28_v3 = vmul.f32 0.015625, %v26_v2 }
  0x93   :  { %v29_v4 = vsub.f32 %v22_v0, %v28_v3 }
  0x95   :  { %v30_v5 = vmul.f32 %v29_v4, %v29_v4 }
  0x97   :  { %v31_v6 = vsel %vm23_vm0, %v30_v5, 0.0 }
  0x98   :  { %32 = vadd.xlane.f32.xlu0 %v31_v6 }
 0x125   :  { %v33_v12 = vpop.xlane.xlu0 %32 }
 0x126   :  { %v34_v13 = vmul.f32 0.015625, %v33_v12 }
 0x128   :  { %v35_v14 = vadd.f32 1e-06, %v34_v13 }
 0x12a   :  { %186 = vrsqrt.f32 %v35_v14 }
 0x134   :  { %v187_v15 = vpop.eup %186 }
 0x135   :  { %v37_v17 = vmul.f32 %v187_v15, %v29_v4 }
 0x137   :  { %v45_v19 = vmul.f32 %v154_v16, %v37_v17 }
 0x139   :  { %v53_v20 = vadd.f32 %v155_v18, %v45_v19 }
 0x13b   :  { %v54_v21 = vpack.c.bf16 %v53_v20, %v53_v20 }
 0x13d   :  { %176 = vmatmul.mubr.msk.bf16.vlgmr.msra.gmra.mrb[0].mxu0 %vm94_vm2, %v54_v21 }
 0x210   :  { %v132_v23 = vpop.f32.mrb[0].mxu0 }
 0x211   :  { %v133_v24 = vadd.f32 %v156_v22, %v132_v23  ;;  %v177_v25 = vpop.f32.mrb[1].mxu0 }
 0x212   :  { %v135_v26 = vpop.f32.mrb[2].mxu0 }
 0x213   :  { %v178_v27 = vpop.f32.mrb[3].mxu0  ;;  %139 = vst.msk [vmem:[#allocation3] sm:$0x3] %vm138_vm3, %v133_v24 }
 0x214   :  { %199 = shalt.err (!%p196_p4)
}
 0x215   :  { %s200_s4 = scalar_lea.hbm %s286_s5, 32 }
 0x216   :  { %p201_p5 = scmp.ne.s32.totalorder %s286_s5, %s200_s4  ;;  %p204_p6 = scmp.lt.u32.totalorder %s200_s4, %s286_s5 }
 0x218   :  { %p206_p7 = pnand %p204_p6, %p201_p5 }
 0x21a   :  { %209 = shalt.err (!%p206_p7)
}
 0x21b   :  { %149 = dma.vmem_to_hbm [thread:$0]  %s147_s8, 32, %s286_s5, [#allocation4]  }
 0x21c   :  { %210 = dma.done.wait [#allocation4], 32  }
 0x21d   :  { %211 = vsyncadd [#allocation4], 4294967264 }
 0x21e   :  { %153 = vsyncpa [#allocation4], 1 }

</bundles_post_ra>
